<compile_context>
chip_gen: v6e
topology: v6e:2x2x1
jax: 0.10.0
libtpu: 0.0.40
codegen_flags: <defaults>
</compile_context>

<pallas_src>
import jax
import jax.numpy as jnp
import numpy as np
from jax.experimental import pallas as pl
from jax.experimental.pallas import tpu as pltpu


def _round_up(x, m):
    return ((x + m - 1) // m) * m


def _pick_block_b(B, N, d_pad, itemsize=4, budget_bytes=24 * 1024 * 1024):
    """Batch tile: the double-buffered x block (2*N*tB*Dp) plus the double-buffered
    output block (2*tB*Dp) must stay inside `budget_bytes`. The tile is MXU-aligned
    (multiple of 128) and, when the batch is large enough, chosen so the batch grid
    has at least two steps (v7x: both TensorCores get work). Budget + the 48 MiB
    vmem_limit below are sized for v7x's 64 MiB physical VMEM (the tightest chip)."""
    per_row = (2 * N + 2) * d_pad * itemsize
    tb = budget_bytes // per_row
    tb = max(128, min(512, (tb // 128) * 128))
    bp = _round_up(B, 8)
    if bp <= tb:
        if bp >= 256:
            tb = _round_up(bp // 2, 128)   # split: >= 2 grid steps for megacore
        else:
            tb = bp                        # tiny batch: one full-batch tile
    return tb


def soft_attention_kernel(x_ref, w1_ref, b1_ref, w2_ref, out_ref, attw_ref):
    """One batch tile.

    x_ref:   (N, tB, Dp)  stacked inputs (batch tile)
    w1_ref:  (Dp, Hp)     first linear weight (x @ W layout, zero-padded)
    b1_ref:  (1, Hp)      first bias (zero-padded)
    w2_ref:  (1, Hp)      second linear weight as a row (zero-padded)
    out_ref: (tB, Dp)     soft-attended output tile
    attw_ref:(tB, N)      softmax attention weights tile (module's self.weights layout)
    """
    N, tB, Dp = x_ref.shape

    w1 = w1_ref[...]          # (Dp, Hp)
    b1 = b1_ref[...]          # (1, Hp)
    w2 = w2_ref[...]          # (1, Hp)

    # --- scorer MLP, fused over the list axis: one MXU matmul with M = N*tB ---
    # tB is a multiple of 8 and Dp a multiple of 128, so collapsing the leading
    # axis is layout-preserving (no relayout).
    x_flat = x_ref[...].reshape(N * tB, Dp)                                  # (N*tB, Dp)
    h = jnp.dot(x_flat, w1, preferred_element_type=jnp.float32) + b1        # (N*tB, Hp)
    h = jnp.maximum(h, 0.0)                                                  # ReLU
    # Linear(H -> 1) as VPU multiply + XLU lane-reduce (avoids a width-1 MXU matmul).
    s = jnp.sum(h * w2, axis=-1, keepdims=True)                              # (N*tB, 1)

    # (N*tB, 1) -> (tB, N): static, sublane-aligned slices, lane-concat of N columns.
    # b2 is omitted: softmax is shift-invariant, so it cannot change the output.
    scores = jnp.concatenate([s[n * tB:(n + 1) * tB, :] for n in range(N)], axis=-1)

    # --- softmax over the list axis (log_softmax().exp() == softmax), exact divide ---
    m = jnp.max(scores, axis=-1, keepdims=True)                              # (tB, 1)
    e = jnp.exp(scores - m)                                                  # (tB, N)
    z = jnp.sum(e, axis=-1, keepdims=True)                                   # (tB, 1)
    w = e / z                                                                # exact (fixes the accuracy bug)

    # --- weighted sum over the list axis (VPU, f32) ---
    acc = w[:, 0:1] * x_ref[0]
    for n in range(1, N):
        acc = acc + w[:, n:n + 1] * x_ref[n]
    out_ref[...] = acc.astype(out_ref.dtype)                                 # (tB, Dp)
    # N=4 lanes -> masked store; ~0.4% of bytes, not worth lane-padding (review: low prio).
    attw_ref[...] = w.astype(attw_ref.dtype)                                 # (tB, N)


def soft_attention(x_stacked, w1, b1, w2, b2=None, *, block_b=None):
    """x_stacked: (N, B, D) f32; w1: (D, H); b1: (1, H); w2: (H, 1); b2: (1, 1).
    Returns (soft (B, D), attention weights (B, N)).
    b2 is accepted for API parity but unused: softmax is invariant to a constant
    shift of the scores, so the module's output does not depend on it."""
    del b2
    N, B, D = x_stacked.shape
    H = w1.shape[1]
    Dp = _round_up(D, 128)
    Hp = _round_up(H, 128)

    tB = block_b if block_b is not None else _pick_block_b(B, N, Dp)
    tB = min(tB, _round_up(B, 8))
    Bp = _round_up(B, tB)

    # Pad ONLY when needed (aligned shapes — e.g. the module default D=512, H=128 —
    # skip the extra HBM round trip entirely). Zero padding is exact: padded D/H
    # columns contribute nothing, padded batch rows are sliced off below.
    x_in = x_stacked if (Bp, Dp) == (B, D) else jnp.pad(
        x_stacked, ((0, 0), (0, Bp - B), (0, Dp - D)))
    w1_in = w1 if (Dp, Hp) == (D, H) else jnp.pad(w1, ((0, Dp - D), (0, Hp - H)))
    b1_in = b1 if Hp == H else jnp.pad(b1, ((0, 0), (0, Hp - H)))
    w2_row = w2.reshape(1, H)
    w2_in = w2_row if Hp == H else jnp.pad(w2_row, ((0, 0), (0, Hp - H)))

    grid = (Bp // tB,)
    flops = 2 * N * Bp * Dp * Hp + 4 * N * Bp * Hp + 3 * N * Bp + 2 * N * Bp * Dp
    bytes_accessed = 4 * (N * Bp * Dp + Bp * Dp + Bp * N + Dp * Hp + 2 * Hp)

    soft_p, attw_p = pl.pallas_call(
        soft_attention_kernel,
        out_shape=(jax.ShapeDtypeStruct((Bp, Dp), jnp.float32),
                   jax.ShapeDtypeStruct((Bp, N), jnp.float32)),
        grid=grid,
        in_specs=[
            pl.BlockSpec((N, tB, Dp), lambda i: (0, i, 0)),          # x: tiled over batch
            pl.BlockSpec((Dp, Hp), lambda i: (0, 0)),                # w1: resident
            pl.BlockSpec((1, Hp), lambda i: (0, 0)),                 # b1: resident
            pl.BlockSpec((1, Hp), lambda i: (0, 0)),                 # w2 row: resident
        ],
        out_specs=(
            pl.BlockSpec((tB, Dp), lambda i: (i, 0)),                # soft (lane-dense)
            pl.BlockSpec((tB, N), lambda i: (i, 0)),                 # attention weights
        ),
        compiler_params=pltpu.CompilerParams(
            dimension_semantics=("parallel",),                        # shard batch across TCs
            vmem_limit_bytes=48 * 1024 * 1024),                       # > v5e/v6e default, < v7x physical
        cost_estimate=pl.CostEstimate(
            flops=flops, transcendentals=N * Bp, bytes_accessed=bytes_accessed),
    )(x_in, w1_in, b1_in, w2_in)

    if (Bp, Dp) != (B, D):
        return soft_p[:B, :D], attw_p[:B, :]
    return soft_p, attw_p


def soft_attention_ref(x_stacked, w1, b1, w2, b2):
    """Pure-JAX reference mirroring the PyTorch forward (including the b2 add,
    which is a no-op under softmax)."""
    h = jnp.maximum(jnp.einsum('nbd,dh->nbh', x_stacked, w1) + b1[0], 0.0)
    scores = jnp.einsum('nbh,h->nb', h, w2[:, 0]) + b2[0, 0]       # (N, B)
    w = jax.nn.softmax(scores.T, axis=1)                           # (B, N); log_softmax().exp()
    soft = jnp.einsum('bn,nbd->bd', w, x_stacked)                  # (B, D)
    return soft, w


if __name__ == "__main__":
    # Small shapes consistent with the module (defaults input_size=512, hidden=128).
    # Aligned so the wrapper hits the no-pad fast path and the batch grid has 2 steps.
    N = 4          # number of tensors in the `inputs` list
    B = 256        # batch
    D = 256        # input_size
    H = 128        # hidden_size

    key = jax.random.PRNGKey(0)
    k_x, k_w1, k_b1, k_w2, k_b2 = jax.random.split(key, 5)

    x_stacked = jax.random.normal(k_x, (N, B, D), dtype=jnp.float32)
    w1 = jax.random.normal(k_w1, (D, H), dtype=jnp.float32) * (1.0 / np.sqrt(D))
    b1 = jax.random.normal(k_b1, (1, H), dtype=jnp.float32) * 0.1
    w2 = jax.random.normal(k_w2, (H, 1), dtype=jnp.float32) * (1.0 / np.sqrt(H))
    b2 = jax.random.normal(k_b2, (1, 1), dtype=jnp.float32) * 0.1

    soft, attw = soft_attention(x_stacked, w1, b1, w2, b2)
    soft, attw = jax.block_until_ready((soft, attw))

    # Exact, precision-independent check: softmax rows must sum to 1 (exact divide now).
    np.testing.assert_allclose(np.asarray(attw).sum(axis=1), np.ones(B, np.float32),
                               rtol=1e-5, atol=1e-5)

    soft_r, attw_r = soft_attention_ref(x_stacked, w1, b1, w2, b2)
    # Tolerance covers the possible difference in f32-matmul handling between the
    # Mosaic MXU path and XLA's default-precision reference einsums (bf16 passes);
    # genuine bugs (wrong softmax axis, missing ReLU, wrong layout) produce errors
    # orders of magnitude larger than this.
    np.testing.assert_allclose(np.asarray(attw), np.asarray(attw_r), rtol=1e-2, atol=1e-2)
    np.testing.assert_allclose(np.asarray(soft), np.asarray(soft_r), rtol=1e-2, atol=1e-2)

    print("KERNEL_OK")
</pallas_src>

<mosaic_0001>
module attributes {stable_mosaic.version = 11 : i64} {
  func.func @soft_attention_kernel(%arg0: i32, %arg1: memref<4x128x256xf32, #tpu.memory_space<vmem>>, %arg2: memref<256x128xf32, #tpu.memory_space<vmem>>, %arg3: memref<1x128xf32, #tpu.memory_space<vmem>>, %arg4: memref<1x128xf32, #tpu.memory_space<vmem>>, %arg5: memref<128x256xf32, #tpu.memory_space<vmem>>, %arg6: memref<128x4xf32, #tpu.memory_space<vmem>>) attributes {dimension_semantics = [#tpu.dimension_semantics<parallel>], iteration_bounds = array<i64: 2>, scalar_prefetch = 0 : i64, scratch_operands = 0 : i64, tpu.core_type = #tpu.core_type<tc>, window_params = [{transform_indices = @transform_0, window_bounds = array<i64: 4, 128, 256>}, {pipeline_mode = #tpu.pipeline_mode<synchronous>, transform_indices = @transform_1, window_bounds = array<i64: 256, 128>}, {pipeline_mode = #tpu.pipeline_mode<synchronous>, transform_indices = @transform_2, window_bounds = array<i64: 1, 128>}, {pipeline_mode = #tpu.pipeline_mode<synchronous>, transform_indices = @transform_3, window_bounds = array<i64: 1, 128>}, {transform_indices = @transform_4, window_bounds = array<i64: 128, 256>}, {transform_indices = @transform_5, window_bounds = array<i64: 128, 4>}]} {
    %c0 = arith.constant 0 : index
    %c0_0 = arith.constant 0 : index
    %0 = vector.load %arg2[%c0, %c0_0] : memref<256x128xf32, #tpu.memory_space<vmem>>, vector<256x128xf32>
    %c0_1 = arith.constant 0 : index
    %c0_2 = arith.constant 0 : index
    %1 = vector.load %arg3[%c0_1, %c0_2] : memref<1x128xf32, #tpu.memory_space<vmem>>, vector<1x128xf32>
    %c0_3 = arith.constant 0 : index
    %c0_4 = arith.constant 0 : index
    %2 = vector.load %arg4[%c0_3, %c0_4] : memref<1x128xf32, #tpu.memory_space<vmem>>, vector<1x128xf32>
    %c0_5 = arith.constant 0 : index
    %c0_6 = arith.constant 0 : index
    %c0_7 = arith.constant 0 : index
    %3 = vector.load %arg1[%c0_5, %c0_6, %c0_7] : memref<4x128x256xf32, #tpu.memory_space<vmem>>, vector<4x128x256xf32>
    %4 = vector.shape_cast %3 : vector<4x128x256xf32> to vector<512x256xf32>
    %cst = arith.constant dense<0.000000e+00> : vector<512x128xf32>
    %5 = tpu.matmul %4, %0, %cst {dimension_numbers = #tpu.dot_dimension_numbers<[1], [0], [0], [1], [0, 0, 1, 1], [], []>} : vector<512x256xf32>, vector<256x128xf32>, vector<512x128xf32> -> vector<512x128xf32>
    %6 = vector.broadcast %1 : vector<1x128xf32> to vector<512x128xf32>
    %7 = arith.addf %5, %6 : vector<512x128xf32>
    %cst_8 = arith.constant 0.000000e+00 : f32
    %8 = vector.broadcast %cst_8 : f32 to vector<512x128xf32>
    %9 = arith.maximumf %7, %8 : vector<512x128xf32>
    %10 = vector.broadcast %2 : vector<1x128xf32> to vector<512x128xf32>
    %11 = arith.mulf %9, %10 : vector<512x128xf32>
    %cst_9 = arith.constant dense<0.000000e+00> : vector<512xf32>
    %12 = vector.multi_reduction <add>, %11, %cst_9 [1] : vector<512x128xf32> to vector<512xf32>
    %13 = vector.shape_cast %12 : vector<512xf32> to vector<512x1xf32>
    %14 = vector.extract_strided_slice %13 {offsets = [0, 0], sizes = [128, 1], strides = [1, 1]} : vector<512x1xf32> to vector<128x1xf32>
    %15 = vector.extract_strided_slice %13 {offsets = [128, 0], sizes = [128, 1], strides = [1, 1]} : vector<512x1xf32> to vector<128x1xf32>
    %16 = vector.extract_strided_slice %13 {offsets = [256, 0], sizes = [128, 1], strides = [1, 1]} : vector<512x1xf32> to vector<128x1xf32>
    %17 = vector.extract_strided_slice %13 {offsets = [384, 0], sizes = [128, 1], strides = [1, 1]} : vector<512x1xf32> to vector<128x1xf32>
    %18 = tpu.concatenate %14, %15, %16, %17 in 1 : vector<128x1xf32>, vector<128x1xf32>, vector<128x1xf32>, vector<128x1xf32> -> vector<128x4xf32>
    %cst_10 = arith.constant dense<0xFF800000> : vector<128xf32>
    %19 = vector.multi_reduction <maximumf>, %18, %cst_10 [1] : vector<128x4xf32> to vector<128xf32>
    %20 = vector.shape_cast %19 : vector<128xf32> to vector<128x1xf32>
    %21 = vector.broadcast %20 : vector<128x1xf32> to vector<128x4xf32>
    %22 = arith.subf %18, %21 : vector<128x4xf32>
    %23 = math.exp %22 : vector<128x4xf32>
    %cst_11 = arith.constant dense<0.000000e+00> : vector<128xf32>
    %24 = vector.multi_reduction <add>, %23, %cst_11 [1] : vector<128x4xf32> to vector<128xf32>
    %25 = vector.shape_cast %24 : vector<128xf32> to vector<128x1xf32>
    %26 = vector.broadcast %25 : vector<128x1xf32> to vector<128x4xf32>
    %27 = arith.divf %23, %26 : vector<128x4xf32>
    %28 = vector.extract_strided_slice %27 {offsets = [0, 0], sizes = [128, 1], strides = [1, 1]} : vector<128x4xf32> to vector<128x1xf32>
    %c0_12 = arith.constant 0 : index
    %c0_13 = arith.constant 0 : index
    %c0_14 = arith.constant 0 : index
    %29 = vector.load %arg1[%c0_12, %c0_13, %c0_14] : memref<4x128x256xf32, #tpu.memory_space<vmem>>, vector<1x128x256xf32>
    %30 = vector.shape_cast %29 : vector<1x128x256xf32> to vector<128x256xf32>
    %31 = vector.broadcast %28 : vector<128x1xf32> to vector<128x256xf32>
    %32 = arith.mulf %31, %30 : vector<128x256xf32>
    %33 = vector.extract_strided_slice %27 {offsets = [0, 1], sizes = [128, 1], strides = [1, 1]} : vector<128x4xf32> to vector<128x1xf32>
    %c1 = arith.constant 1 : index
    %c0_15 = arith.constant 0 : index
    %c0_16 = arith.constant 0 : index
    %34 = vector.load %arg1[%c1, %c0_15, %c0_16] : memref<4x128x256xf32, #tpu.memory_space<vmem>>, vector<1x128x256xf32>
    %35 = vector.shape_cast %34 : vector<1x128x256xf32> to vector<128x256xf32>
    %36 = vector.broadcast %33 : vector<128x1xf32> to vector<128x256xf32>
    %37 = arith.mulf %36, %35 : vector<128x256xf32>
    %38 = arith.addf %32, %37 : vector<128x256xf32>
    %39 = vector.extract_strided_slice %27 {offsets = [0, 2], sizes = [128, 1], strides = [1, 1]} : vector<128x4xf32> to vector<128x1xf32>
    %c2 = arith.constant 2 : index
    %c0_17 = arith.constant 0 : index
    %c0_18 = arith.constant 0 : index
    %40 = vector.load %arg1[%c2, %c0_17, %c0_18] : memref<4x128x256xf32, #tpu.memory_space<vmem>>, vector<1x128x256xf32>
    %41 = vector.shape_cast %40 : vector<1x128x256xf32> to vector<128x256xf32>
    %42 = vector.broadcast %39 : vector<128x1xf32> to vector<128x256xf32>
    %43 = arith.mulf %42, %41 : vector<128x256xf32>
    %44 = arith.addf %38, %43 : vector<128x256xf32>
    %45 = vector.extract_strided_slice %27 {offsets = [0, 3], sizes = [128, 1], strides = [1, 1]} : vector<128x4xf32> to vector<128x1xf32>
    %c3 = arith.constant 3 : index
    %c0_19 = arith.constant 0 : index
    %c0_20 = arith.constant 0 : index
    %46 = vector.load %arg1[%c3, %c0_19, %c0_20] : memref<4x128x256xf32, #tpu.memory_space<vmem>>, vector<1x128x256xf32>
    %47 = vector.shape_cast %46 : vector<1x128x256xf32> to vector<128x256xf32>
    %48 = vector.broadcast %45 : vector<128x1xf32> to vector<128x256xf32>
    %49 = arith.mulf %48, %47 : vector<128x256xf32>
    %50 = arith.addf %44, %49 : vector<128x256xf32>
    %c0_21 = arith.constant 0 : index
    %c0_22 = arith.constant 0 : index
    %51 = vector.load %arg5[%c0_21, %c0_22] : memref<128x256xf32, #tpu.memory_space<vmem>>, vector<128x256xf32>
    tpu.vector_store %arg5[%c0_21, %c0_22], %50 {strides = array<i32>} : memref<128x256xf32, #tpu.memory_space<vmem>>, vector<128x256xf32>,
    %c0_23 = arith.constant 0 : index
    %c0_24 = arith.constant 0 : index
    %52 = vector.load %arg6[%c0_23, %c0_24] : memref<128x4xf32, #tpu.memory_space<vmem>>, vector<128x4xf32>
    tpu.vector_store %arg6[%c0_23, %c0_24], %27 {strides = array<i32>} : memref<128x4xf32, #tpu.memory_space<vmem>>, vector<128x4xf32>,
    return
  }
  func.func @transform_0(%arg0: i32) -> (i32, i32, i32) {
    %c0_i32 = arith.constant 0 : i32
    %c0_i32_0 = arith.constant 0 : i32
    %c0_i32_1 = arith.constant 0 : i32
    return %c0_i32, %arg0, %c0_i32_0 : i32, i32, i32
  }
  func.func @transform_1(%arg0: i32) -> (i32, i32) {
    %c0_i32 = arith.constant 0 : i32
    %c0_i32_0 = arith.constant 0 : i32
    %c0_i32_1 = arith.constant 0 : i32
    return %c0_i32, %c0_i32_0 : i32, i32
  }
  func.func @transform_2(%arg0: i32) -> (i32, i32) {
    %c0_i32 = arith.constant 0 : i32
    %c0_i32_0 = arith.constant 0 : i32
    %c0_i32_1 = arith.constant 0 : i32
    return %c0_i32, %c0_i32_0 : i32, i32
  }
  func.func @transform_3(%arg0: i32) -> (i32, i32) {
    %c0_i32 = arith.constant 0 : i32
    %c0_i32_0 = arith.constant 0 : i32
    %c0_i32_1 = arith.constant 0 : i32
    return %c0_i32, %c0_i32_0 : i32, i32
  }
  func.func @transform_4(%arg0: i32) -> (i32, i32) {
    %c0_i32 = arith.constant 0 : i32
    %c0_i32_0 = arith.constant 0 : i32
    return %arg0, %c0_i32 : i32, i32
  }
  func.func @transform_5(%arg0: i32) -> (i32, i32) {
    %c0_i32 = arith.constant 0 : i32
    %c0_i32_0 = arith.constant 0 : i32
    return %arg0, %c0_i32 : i32, i32
  }
}

</mosaic_0001>

<bundles_post_ra>
// kernel: tpu_custom_call.1
= control target key start
LH: loop header
LB: loop body
LE: loop exit
PB: predicated region body
PF: predicated region fallthrough
CT: control target
= control target key end

     0   :  { %s3820_s0 = inlined_call_operand.hbm [shape: f32[4,256,256], index: 0, kind: input, shape index: {}]   ;;  %s3821_s1 = inlined_call_operand.hbm [shape: f32[256,128], index: 1, kind: input, shape index: {}]   ;;  %s3822_s2 = inlined_call_operand.vmem [shape: f32[1,128], index: 2, kind: input, shape index: {}]   ;;  %s3823_s3 = inlined_call_operand.vmem [shape: f32[1,128], index: 3, kind: input, shape index: {}]   ;;  %s3824_s4 = inlined_call_operand.hbm [shape: f32[256,256], index: 4, kind: output, shape index: {0}]   ;;  %s3825_s5 = inlined_call_operand.vmem [shape: f32[256,4], index: 5, kind: output, shape index: {1}]  }
   0x1   :  { %3828 = sst [smem:[#allocation14_spill]] %s3821_s1 }
   0x2   :  { %11 = vsyncpa [#allocation3], 0 }
   0x3   :  { %13 = vsyncpa [#allocation3 + $0x1], 0 }
   0x4   :  { %14 = vsyncpa [#allocation6], 0 }
   0x5   :  { %15 = vsyncpa [#allocation4], 0 }
   0x6   :  { %17 = vsyncpa [#allocation4 + $0x1], 0  ;;  %s2681_s18 = smov 0   ;;  %s2683_s19 = smov 0  }
   0x7   :  { %s2685_s20 = smov 0   ;;  %s2687_s21 = smov 0  }
   0x8 LB: > { %s2702_s22 = sadd.s32 4294967295, %s2633_s21   ;;  %s2150_s23 = sadd.s32 4294967294, %s2633_s21   ;;  %s2633_s21 = sphi %s2687_s21, %s3841_s21   ;;  %s2629_s20 = sphi %s2685_s20, %s3840_s20   ;;  %s2625_s19 = sphi %s2683_s19, %s3839_s19   ;;  %s2621_s18 = sphi %s2681_s18, %s3838_s18  }
   0x9   : > { %s2706_s24 = sadd.s32 1, %s2633_s21   ;;  %s30_s25 = sadd.s32 1, %s2629_s20 }
   0xa   : > { %s27_s26 = ssub.s32 %s2633_s21, %s2706_s24  ;;  %p37_p0 = scmp.ne.s32.totalorder %s2629_s20, %s2625_s19 }
   0xb   : > { %p28_p1 = scmp.eq.s32.totalorder %s27_s26, 0  ;;  %p38_p2 = scmp.eq.s32.totalorder %s2633_s21, 0 }
   0xc   : > { %p43_p3 = scmp.ne.s32.totalorder %s2625_s19, %s2621_s18  ;;  %p44_p4 = scmp.eq.s32.totalorder %s2702_s22, 0 }
   0xd   : > { %s2718_s27 = scalar_select %p28_p1, %s2629_s20, %s30_s25  }
   0xe   : > { %p2720_p5 = por %p38_p2, %p37_p0  ;;  %p2726_p6 = por %p44_p4, %p43_p3 }
   0xf   : > { %p130_p7 = scmp.eq.s32.totalorder %s2702_s22, 1  ;;  %p136_p8 = scmp.eq.s32.totalorder %s2150_s23, 1 }
  0x10   : > { %s3830_s29 = scalar_select %p2726_p6, 1, 0 }
  0x11   : > { %p2151_p9 = scmp.ge.s32.totalorder %s2633_s21, 1  ;;  %p169_p10 = scmp.lt.s32.totalorder %s2633_s21, 3 }
  0x12   : > { %p2733_p11 = por %p130_p7, %p37_p0  ;;  %p2737_p12 = por %p136_p8, %p43_p3 }
  0x13   : > { %p2741_p13 = pnand %p2151_p9, %p169_p10  ;;  %s2635_s8 = smov [#allocation5]  }
  0x14   : > { %s3831_s30 = scalar_select %p2733_p11, 1, 0 }
  0x15   : > { %s3832_s6 = scalar_select %p2737_p12, 1, 0 }
  0x16   : > { %p2353_p1 = pneg %p2741_p13  ;;  %s181_s9 = sshll.u32 %s2635_s8, 4  ;;  %s182_s9 = int_to_ptr.vmem [resolvable:$true] %s181_s9 }
  0x17   : > { %s2550_s10 = scalar_lea.vmem %s182_s9, 4096  ;;  %p2558_p8 = scmp.lt.s32.totalorder %s182_s9, %s182_s9 }
  0x18   : > { %p2354_p2 = pnand %p2353_p1, %p44_p4  ;;  %p2551_p7 = scmp.ne.s32.totalorder %s182_s9, %s2550_s10 }
  0x19   : > { %p2559_p6 = scmp.lt.s32.totalorder %s2550_s10, %s2550_s10 }
  0x1a   : > { %p2541_p0 = pneg %p2354_p2 }
  0x1b   : > { %p2560_p12 = por %p2559_p6, %p2558_p8 }
  0x1c   : > { %p2553_p11 = pnand %p2551_p7, %p2541_p0 }
  0x1e   : > { %p2554_p3 = pneg %p2553_p11 }
  0x20   : > { %p2561_p9 = pnand %p2560_p12, %p2554_p3 }
  0x22   : > { %2564 = shalt.err (!%p2561_p9)
}
  0x23   : > { %s2636_s11 = smov 128   ;;  %s2637_s12 = smov 8  }
  0x24   : > { %s3834_s1 = sld [smem:[#allocation14_spill]]  ;;  %p2153_p10 = scmp.ge.s32.totalorder %s2633_s21, 2 }
  0x26   : > { %197 = sbr.rel (%p2153_p10) target bundleno = 56 (0x38), region = 28 }
  0x2a   : > { %2356 = dma.hbm_to_vmem [thread:$0]  (!%p2354_p2), %s3834_s1, 4096, %s182_s9, [#allocation6], %s2636_s11, %s2636_s11, %s2637_s12  }
  0x2b   : > { %s201_s15 = sand.u32 1, %s2629_s20   ;;  %s2271_s17 = sshll.u32 %s2633_s21, 12 }
  0x2c   : > { %s2154_s16 = sshll.u32 %s201_s15, 10  ;;  %s212_s8 = scalar_lea.hbm %s3820_s0, %s2271_s17 }
  0x2d   : > { %s2340_s23 = scalar_select %p2720_p5, [#allocation0], [#allocation10] }
  0x2e   : > { %s205_s10 = scalar_lea.vmem [#allocation2], %s2154_s16  ;;  %s2638_s12 = smov 8192  }
  0x2f   : > { %s217_s9 = sld [smem:[%s2340_s23]]   ;;  %s225_s11 = sshll.u32 %s205_s10, 4  ;;  %s226_s11 = int_to_ptr.vmem [resolvable:$true] %s225_s11 }
  0x30   : > { %2341 = sst [smem:[#allocation9]] (%p2720_p5), %s2638_s12  ;;  %s2639_s13 = smov 4096  }
  0x31   : > { %2342 = sst [smem:[#allocation9 + $0x1]] (%p2720_p5), %s2639_s13  ;;  %s2640_s14 = smov 16  }
  0x32   : > { %2343 = sst [smem:[#allocation9 + $0x2]] (%p2720_p5), %s2640_s14  ;;  %s2641_s1 = smov 256  }
  0x33   : > { %2344 = sst [smem:[#allocation9 + $0x3]] (%p2720_p5), %s2641_s1  ;;  %s202_s23 = scalar_lea.sflag [#allocation3], %s201_s15 }
  0x34   : > { %2345 = sst [smem:[#allocation9 + $0x4]] (%p2720_p5), %s2641_s1  ;;  %s2642_s25 = smov 131072  }
  0x35   : > { %s2158_s17 = sshll.u32 %s217_s9, 26  ;;  %2346 = sst [smem:[#allocation9 + $0x5]] (%p2720_p5), %s2640_s14 }
  0x36   : > { %s2159_s16 = sadd.s32 134217728, %s2158_s17 }
  0x37   : > { %2347 = dma.general (%p2720_p5), %s212_s8, 16384, %s226_s11, %s202_s23, %s2642_s25, [#allocation9], %s2159_s16, 0  }
  0x38 PF: > { %250 = sbr.rel (%p2741_p13) target bundleno = 1170 (0x492), region = 36  ;;  %s2779_s26 = sand.u32 (!%p2741_p13), 1, %s2625_s19  }
  0x39   : > { %s2161_s10 = sshll.u32 (!%p2741_p13), %s2779_s26, 10  ;;  %s253_s1 = scalar_lea.sflag (!%p2741_p13), [#allocation3], %s2779_s26 }
  0x3a   : > { %s2783_s9 = scalar_lea.vmem (!%p2741_p13), [#allocation2], %s2161_s10  ;;  %p3835_p6 = scmp.ne.s32.totalorder (!%p2741_p13), %s3830_s29, 0 }
  0x3d   : > { %2608 = dma.done.wait (%p3835_p6), %s253_s1, 16384  }
  0x3e   : > { %2610 = vsyncadd (%p3835_p6), %s253_s1, 4294950912 }
  0x3f   : > { %2612 = dma.done.wait (%p44_p4), [#allocation6], 4096  }
  0x40   : > { %2614 = vsyncadd (%p44_p4), [#allocation6], 4294963200  ;;  %v2643_v0 = vmov 0.0   ;;  %v315_v1 = vld [vmem:[#allocation5 + $0x78] sm:$0xff]  ;;  %v314_v2 = vld [vmem:[#allocation5 + $0x70] sm:$0xff]  ;;  %vm1115_vm0 = vcmask 7168  }
  0x41   : > { %468 = vmatprep.subr.mxu0 %v2643_v0  ;;  %2274 = vmatprep.subr.mxu1 %v2643_v0  ;;  %v313_v3 = vld [vmem:[#allocation5 + $0x68] sm:$0xff]  ;;  %v312_v4 = vld [vmem:[#allocation5 + $0x60] sm:$0xff]  ;;  %v311_v5 = vld [vmem:[#allocation5 + $0x58] sm:$0xff]  ;;  %vm1132_vm1 = vcmask 15360   ;;  %vm1149_vm2 = vcmask 23552   ;;  %vm1166_vm3 = vcmask 31744  }
  0x42   : > { %469 = vmatpush1.msra.mxu0 %v315_v1  ;;  %2306 = vmatpush1.msra.mxu1 %v315_v1  ;;  %v310_v6 = vld [vmem:[#allocation5 + $0x50] sm:$0xff]  ;;  %v309_v7 = vld [vmem:[#allocation5 + $0x48] sm:$0xff]  ;;  %v308_v8 = vld [vmem:[#allocation5 + $0x40] sm:$0xff]  ;;  %s2164_s8 = sshll.u32 %s2702_s22, 4  ;;  %s2163_s17 = sshll.u32 %s2779_s26, 8 }
  0x43   : > { %470 = vmatprep.subr.mxu0 %v2643_v0  ;;  %2275 = vmatprep.subr.mxu1 %v2643_v0  ;;  %v307_v9 = vld [vmem:[#allocation5 + $0x38] sm:$0xff]  ;;  %v306_v10 = vld [vmem:[#allocation5 + $0x30] sm:$0xff]  ;;  %v305_v11 = vld [vmem:[#allocation5 + $0x28] sm:$0xff]  ;;  %p295_p4 = scmp.lt.s32.totalorder %s2164_s8, 31  ;;  %s3581_s16 = scalar_lea.vmem [#allocation7], %s2163_s17 }
  0x44   : > { %471 = vmatpush1.msra.mxu0 %v314_v2  ;;  %2307 = vmatpush1.msra.mxu1 %v314_v2  ;;  %v304_v12 = vld [vmem:[#allocation5 + $0x20] sm:$0xff]  ;;  %v303_v13 = vld [vmem:[#allocation5 + $0x18] sm:$0xff]  ;;  %v302_v14 = vld [vmem:[#allocation5 + $0x10] sm:$0xff]  ;;  %s2273_s23 = sshll.u32 %s2702_s22, 12  ;;  %s2038_s25 = sshll.u32 %s3581_s16, 4  ;;  %s3775_s25 = int_to_ptr.vmem [resolvable:$true] %s2038_s25 }
  0x45   : > { %472 = vmatprep.subr.mxu0 %v2643_v0  ;;  %2276 = vmatprep.subr.mxu1 %v2643_v0  ;;  %v301_v15 = vld [vmem:[#allocation5 + $0x8] sm:$0xff]  ;;  %v300_v16 = vld [vmem:[#allocation5] sm:$0xff]  ;;  %v331_v17 = vld [vmem:[#allocation5 + $0xf8] sm:$0xff]  ;;  %s3843_s8 = smov (!%p295_p4, %s2164_s8), 31  ;;  %s3773_s28 = scalar_lea.hbm %s3824_s4, %s2273_s23 }
  0x46   : > { %473 = vmatpush1.msra.mxu0 %v313_v3  ;;  %2308 = vmatpush1.msra.mxu1 %v313_v3  ;;  %v330_v18 = vld [vmem:[#allocation5 + $0xf0] sm:$0xff]  ;;  %v329_v19 = vld [vmem:[#allocation5 + $0xe8] sm:$0xff]  ;;  %v328_v20 = vld [vmem:[#allocation5 + $0xe0] sm:$0xff]  ;;  %s2165_s11 = sshll.u32 %s3843_s8, 3  ;;  %s2019_s22 = scalar_lea.sflag [#allocation4], %s2779_s26 }
  0x47   : > { %474 = vmatprep.subr.mxu0 %v2643_v0  ;;  %2277 = vmatprep.subr.mxu1 %v2643_v0  ;;  %v327_v21 = vld [vmem:[#allocation5 + $0xd8] sm:$0xff]  ;;  %v326_v22 = vld [vmem:[#allocation5 + $0xd0] sm:$0xff]  ;;  %v325_v23 = vld [vmem:[#allocation5 + $0xc8] sm:$0xff]  ;;  %s3384_s14 = scalar_lea.vmem %s3825_s5, %s2165_s11  ;;  %p3836_p11 = scmp.ne.s32.totalorder %s3831_s30, 0 }
  0x48   : > { %475 = vmatpush1.msra.mxu0 %v312_v4  ;;  %2309 = vmatpush1.msra.mxu1 %v312_v4  ;;  %v324_v24 = vld [vmem:[#allocation5 + $0xc0] sm:$0xff]  ;;  %v323_v25 = vld [vmem:[#allocation5 + $0xb8] sm:$0xff]  ;;  %v322_v26 = vld [vmem:[#allocation5 + $0xb0] sm:$0xff]  ;;  %s2648_s29 = smov [#allocation7]  }
  0x49   : > { %476 = vmatprep.subr.mxu0 %v2643_v0  ;;  %2278 = vmatprep.subr.mxu1 %v2643_v0  ;;  %v321_v27 = vld [vmem:[#allocation5 + $0xa8] sm:$0xff]  ;;  %v320_v28 = vld [vmem:[#allocation5 + $0xa0] sm:$0xff]  ;;  %v319_v29 = vld [vmem:[#allocation5 + $0x98] sm:$0xff]  ;;  %s2569_s7 = sshll.u32 %s2648_s29, 4  ;;  %s2570_s7 = int_to_ptr.vmem [resolvable:$false] %s2569_s7 }
  0x4a   : > { %477 = vmatpush1.msra.mxu0 %v311_v5  ;;  %2310 = vmatpush1.msra.mxu1 %v311_v5  ;;  %v318_v30 = vld [vmem:[#allocation5 + $0x90] sm:$0xff]  ;;  %v317_v31 = vld [vmem:[#allocation5 + $0x88] sm:$0xff]  ;;  %v316_v32 = vld [vmem:[#allocation5 + $0x80] sm:$0xff]  ;;  %s2571_s15 = scalar_lea.vmem %s2570_s7, 8192  ;;  %p2572_p1 = scmp.lt.s32.totalorder %s3775_s25, %s2570_s7 }
  0x4b   : > { %478 = vmatprep.subr.mxu0 %v2643_v0  ;;  %2279 = vmatprep.subr.mxu1 %v2643_v0  ;;  %v335_v33 = vld [vmem:[%s2783_s9 + $0x8] sm:$0xff]  ;;  %v334_v35 = vld [vmem:[%s2783_s9] sm:$0xff]  ;;  %v337_v37 = vld [vmem:[%s2783_s9 + $0x18] sm:$0xff] }
  0x4c   : > { %479 = vmatpush1.msra.mxu0 %v310_v6  ;;  %2311 = vmatpush1.msra.mxu1 %v310_v6  ;;  %v399_v34 = vld [vmem:[%s2783_s9 + $0x208] sm:$0xff]  ;;  %v398_v36 = vld [vmem:[%s2783_s9 + $0x200] sm:$0xff]  ;;  %v401_v38 = vld [vmem:[%s2783_s9 + $0x218] sm:$0xff] }
  0x4d   : > { %480 = vmatprep.subr.mxu0 %v2643_v0  ;;  %2280 = vmatprep.subr.mxu1 %v2643_v0  ;;  %v336_v39 = vld [vmem:[%s2783_s9 + $0x10] sm:$0xff]  ;;  %v339_v41 = vld [vmem:[%s2783_s9 + $0x28] sm:$0xff]  ;;  %v338_v43 = vld [vmem:[%s2783_s9 + $0x20] sm:$0xff] }
  0x4e   : > { %481 = vmatpush1.msra.mxu0 %v309_v7  ;;  %2312 = vmatpush1.msra.mxu1 %v309_v7  ;;  %v400_v40 = vld [vmem:[%s2783_s9 + $0x210] sm:$0xff]  ;;  %v403_v42 = vld [vmem:[%s2783_s9 + $0x228] sm:$0xff]  ;;  %v402_v44 = vld [vmem:[%s2783_s9 + $0x220] sm:$0xff] }
  0x4f   : > { %482 = vmatprep.subr.mxu0 %v2643_v0  ;;  %2281 = vmatprep.subr.mxu1 %v2643_v0  ;;  %v341_v45 = vld [vmem:[%s2783_s9 + $0x38] sm:$0xff]  ;;  %v340_v47 = vld [vmem:[%s2783_s9 + $0x30] sm:$0xff]  ;;  %v343_v49 = vld [vmem:[%s2783_s9 + $0x48] sm:$0xff] }
  0x50   : > { %483 = vmatpush1.msra.mxu0 %v308_v8  ;;  %2313 = vmatpush1.msra.mxu1 %v308_v8  ;;  %v405_v46 = vld [vmem:[%s2783_s9 + $0x238] sm:$0xff]  ;;  %v404_v48 = vld [vmem:[%s2783_s9 + $0x230] sm:$0xff]  ;;  %v407_v50 = vld [vmem:[%s2783_s9 + $0x248] sm:$0xff] }
  0x51   : > { %484 = vmatprep.subr.mxu0 %v2643_v0  ;;  %2282 = vmatprep.subr.mxu1 %v2643_v0  ;;  %v342_v51 = vld [vmem:[%s2783_s9 + $0x40] sm:$0xff]  ;;  %v345_v53 = vld [vmem:[%s2783_s9 + $0x58] sm:$0xff]  ;;  %v344_v55 = vld [vmem:[%s2783_s9 + $0x50] sm:$0xff] }
  0x52   : > { %485 = vmatpush1.msra.mxu0 %v307_v9  ;;  %2314 = vmatpush1.msra.mxu1 %v307_v9  ;;  %v406_v52 = vld [vmem:[%s2783_s9 + $0x240] sm:$0xff]  ;;  %v409_v54 = vld [vmem:[%s2783_s9 + $0x258] sm:$0xff]  ;;  %v408_v56 = vld [vmem:[%s2783_s9 + $0x250] sm:$0xff] }
  0x53   : > { %486 = vmatprep.subr.mxu0 %v2643_v0  ;;  %2283 = vmatprep.subr.mxu1 %v2643_v0  ;;  %v347_v57 = vld [vmem:[%s2783_s9 + $0x68] sm:$0xff]  ;;  %v346_v59 = vld [vmem:[%s2783_s9 + $0x60] sm:$0xff]  ;;  %v349_v61 = vld [vmem:[%s2783_s9 + $0x78] sm:$0xff] }
  0x54   : > { %487 = vmatpush1.msra.mxu0 %v306_v10  ;;  %2315 = vmatpush1.msra.mxu1 %v306_v10  ;;  %v411_v58 = vld [vmem:[%s2783_s9 + $0x268] sm:$0xff]  ;;  %v410_v60 = vld [vmem:[%s2783_s9 + $0x260] sm:$0xff]  ;;  %v413_v62 = vld [vmem:[%s2783_s9 + $0x278] sm:$0xff] }
  0x55   : > { %488 = vmatprep.subr.mxu0 %v2643_v0  ;;  %2284 = vmatprep.subr.mxu1 %v2643_v0  ;;  %v348_v63 = vld [vmem:[%s2783_s9 + $0x70] sm:$0xff]  ;;  %v351_v1 = vld [vmem:[%s2783_s9 + $0x88] sm:$0xff]  ;;  %v350_v3 = vld [vmem:[%s2783_s9 + $0x80] sm:$0xff] }
  0x56   : > { %489 = vmatpush1.msra.mxu0 %v305_v11  ;;  %2316 = vmatpush1.msra.mxu1 %v305_v11  ;;  %v415_v2 = vld [vmem:[%s2783_s9 + $0x288] sm:$0xff]  ;;  %v414_v4 = vld [vmem:[%s2783_s9 + $0x280] sm:$0xff]  ;;  %v353_v5 = vld [vmem:[%s2783_s9 + $0x98] sm:$0xff] }
  0x57   : > { %490 = vmatprep.subr.mxu0 %v2643_v0  ;;  %2285 = vmatprep.subr.mxu1 %v2643_v0  ;;  %v417_v6 = vld [vmem:[%s2783_s9 + $0x298] sm:$0xff]  ;;  %v352_v7 = vld [vmem:[%s2783_s9 + $0x90] sm:$0xff]  ;;  %v355_v9 = vld [vmem:[%s2783_s9 + $0xa8] sm:$0xff] }
  0x58   : > { %491 = vmatpush1.msra.mxu0 %v304_v12  ;;  %2317 = vmatpush1.msra.mxu1 %v304_v12  ;;  %v416_v8 = vld [vmem:[%s2783_s9 + $0x290] sm:$0xff]  ;;  %v419_v10 = vld [vmem:[%s2783_s9 + $0x2a8] sm:$0xff]  ;;  %v354_v11 = vld [vmem:[%s2783_s9 + $0xa0] sm:$0xff] }
  0x59   : > { %492 = vmatprep.subr.mxu0 %v2643_v0  ;;  %2286 = vmatprep.subr.mxu1 %v2643_v0  ;;  %v418_v12 = vld [vmem:[%s2783_s9 + $0x2a0] sm:$0xff] }
  0x5a   : > { %493 = vmatpush1.msra.mxu0 %v303_v13  ;;  %2318 = vmatpush1.msra.mxu1 %v303_v13  ;;  %v357_v13 = vld [vmem:[%s2783_s9 + $0xb8] sm:$0xff] }
  0x5b   : > { %494 = vmatprep.subr.mxu0 %v2643_v0  ;;  %2287 = vmatprep.subr.mxu1 %v2643_v0 }
  0x5c   : > { %495 = vmatpush1.msra.mxu0 %v302_v14  ;;  %2319 = vmatpush1.msra.mxu1 %v302_v14  ;;  %v421_v14 = vld [vmem:[%s2783_s9 + $0x2b8] sm:$0xff] }
  0x5d   : > { %496 = vmatprep.subr.mxu0 %v2643_v0  ;;  %2288 = vmatprep.subr.mxu1 %v2643_v0 }
  0x5e   : > { %497 = vmatpush1.msra.mxu0 %v301_v15  ;;  %2320 = vmatpush1.msra.mxu1 %v301_v15  ;;  %v356_v15 = vld [vmem:[%s2783_s9 + $0xb0] sm:$0xff] }
  0x5f   : > { %498 = vmatprep.subr.mxu0 %v2643_v0  ;;  %2289 = vmatprep.subr.mxu1 %v2643_v0 }
  0x60   : > { %499 = vmatpush1.msra.mxu0 %v300_v16  ;;  %2321 = vmatpush1.msra.mxu1 %v300_v16  ;;  %v420_v16 = vld [vmem:[%s2783_s9 + $0x2b0] sm:$0xff] }
  0x61   : > { %500 = vmatprep.subr.mxu0 %v2643_v0  ;;  %2290 = vmatprep.subr.mxu1 %v2643_v0 }
  0x62   : > { %501 = vmatpush2.msra.mxu0 %v331_v17  ;;  %2322 = vmatpush2.msra.mxu1 %v331_v17  ;;  %v359_v17 = vld [vmem:[%s2783_s9 + $0xc8] sm:$0xff] }
  0x63   : > { %502 = vmatprep.subr.mxu0 %v2643_v0  ;;  %2291 = vmatprep.subr.mxu1 %v2643_v0 }
  0x64   : > { %503 = vmatpush2.msra.mxu0 %v330_v18  ;;  %2323 = vmatpush2.msra.mxu1 %v330_v18  ;;  %v423_v18 = vld [vmem:[%s2783_s9 + $0x2c8] sm:$0xff] }
  0x65   : > { %504 = vmatprep.subr.mxu0 %v2643_v0  ;;  %2292 = vmatprep.subr.mxu1 %v2643_v0 }
  0x66   : > { %505 = vmatpush2.msra.mxu0 %v329_v19  ;;  %2324 = vmatpush2.msra.mxu1 %v329_v19  ;;  %v358_v19 = vld [vmem:[%s2783_s9 + $0xc0] sm:$0xff] }
  0x67   : > { %506 = vmatprep.subr.mxu0 %v2643_v0  ;;  %2293 = vmatprep.subr.mxu1 %v2643_v0 }
  0x68   : > { %507 = vmatpush2.msra.mxu0 %v328_v20  ;;  %2325 = vmatpush2.msra.mxu1 %v328_v20  ;;  %v422_v20 = vld [vmem:[%s2783_s9 + $0x2c0] sm:$0xff] }
  0x69   : > { %508 = vmatprep.subr.mxu0 %v2643_v0  ;;  %2294 = vmatprep.subr.mxu1 %v2643_v0 }
  0x6a   : > { %509 = vmatpush2.msra.mxu0 %v327_v21  ;;  %2326 = vmatpush2.msra.mxu1 %v327_v21  ;;  %v361_v21 = vld [vmem:[%s2783_s9 + $0xd8] sm:$0xff] }
  0x6b   : > { %510 = vmatprep.subr.mxu0 %v2643_v0  ;;  %2295 = vmatprep.subr.mxu1 %v2643_v0 }
  0x6c   : > { %511 = vmatpush2.msra.mxu0 %v326_v22  ;;  %2327 = vmatpush2.msra.mxu1 %v326_v22  ;;  %v425_v22 = vld [vmem:[%s2783_s9 + $0x2d8] sm:$0xff] }
  0x6d   : > { %512 = vmatprep.subr.mxu0 %v2643_v0  ;;  %2296 = vmatprep.subr.mxu1 %v2643_v0 }
  0x6e   : > { %513 = vmatpush2.msra.mxu0 %v325_v23  ;;  %2328 = vmatpush2.msra.mxu1 %v325_v23  ;;  %v360_v23 = vld [vmem:[%s2783_s9 + $0xd0] sm:$0xff] }
  0x6f   : > { %514 = vmatprep.subr.mxu0 %v2643_v0  ;;  %2297 = vmatprep.subr.mxu1 %v2643_v0 }
  0x70   : > { %515 = vmatpush2.msra.mxu0 %v324_v24  ;;  %2329 = vmatpush2.msra.mxu1 %v324_v24  ;;  %v424_v24 = vld [vmem:[%s2783_s9 + $0x2d0] sm:$0xff] }
  0x71   : > { %516 = vmatprep.subr.mxu0 %v2643_v0  ;;  %2298 = vmatprep.subr.mxu1 %v2643_v0 }
  0x72   : > { %517 = vmatpush2.msra.mxu0 %v323_v25  ;;  %2330 = vmatpush2.msra.mxu1 %v323_v25  ;;  %v363_v25 = vld [vmem:[%s2783_s9 + $0xe8] sm:$0xff] }
  0x73   : > { %518 = vmatprep.subr.mxu0 %v2643_v0  ;;  %2299 = vmatprep.subr.mxu1 %v2643_v0 }
  0x74   : > { %519 = vmatpush2.msra.mxu0 %v322_v26  ;;  %2331 = vmatpush2.msra.mxu1 %v322_v26  ;;  %v427_v26 = vld [vmem:[%s2783_s9 + $0x2e8] sm:$0xff] }
  0x75   : > { %520 = vmatprep.subr.mxu0 %v2643_v0  ;;  %2300 = vmatprep.subr.mxu1 %v2643_v0 }
  0x76   : > { %521 = vmatpush2.msra.mxu0 %v321_v27  ;;  %2332 = vmatpush2.msra.mxu1 %v321_v27  ;;  %v362_v27 = vld [vmem:[%s2783_s9 + $0xe0] sm:$0xff] }
  0x77   : > { %522 = vmatprep.subr.mxu0 %v2643_v0  ;;  %2301 = vmatprep.subr.mxu1 %v2643_v0 }
  0x78   : > { %523 = vmatpush2.msra.mxu0 %v320_v28  ;;  %2333 = vmatpush2.msra.mxu1 %v320_v28  ;;  %v426_v28 = vld [vmem:[%s2783_s9 + $0x2e0] sm:$0xff] }
  0x79   : > { %524 = vmatprep.subr.mxu0 %v2643_v0  ;;  %2302 = vmatprep.subr.mxu1 %v2643_v0 }
  0x7a   : > { %525 = vmatpush2.msra.mxu0 %v319_v29  ;;  %2334 = vmatpush2.msra.mxu1 %v319_v29  ;;  %v365_v29 = vld [vmem:[%s2783_s9 + $0xf8] sm:$0xff] }
  0x7b   : > { %526 = vmatprep.subr.mxu0 %v2643_v0  ;;  %2303 = vmatprep.subr.mxu1 %v2643_v0 }
  0x7c   : > { %527 = vmatpush2.msra.mxu0 %v318_v30  ;;  %2335 = vmatpush2.msra.mxu1 %v318_v30  ;;  %v429_v30 = vld [vmem:[%s2783_s9 + $0x2f8] sm:$0xff] }
  0x7d   : > { %528 = vmatprep.subr.mxu0 %v2643_v0  ;;  %2304 = vmatprep.subr.mxu1 %v2643_v0 }
  0x7e   : > { %529 = vmatpush2.msra.mxu0 %v317_v31  ;;  %2336 = vmatpush2.msra.mxu1 %v317_v31  ;;  %v364_v31 = vld [vmem:[%s2783_s9 + $0xf0] sm:$0xff] }
  0x7f   : > { %530 = vmatprep.subr.mxu0 %v2643_v0  ;;  %2305 = vmatprep.subr.mxu1 %v2643_v0  ;;  %v412_v0 = vld [vmem:[%s2783_s9 + $0x270] sm:$0xff] }
  0x80   : > { %531 = vmatpush2.msra.mxu0 %v316_v32  ;;  %2337 = vmatpush2.msra.mxu1 %v316_v32  ;;  %v428_v32 = vld [vmem:[%s2783_s9 + $0x2f0] sm:$0xff] }
  0x81   : > { %532 = vmatprep.mubr.f32.mxu0 %v335_v33  ;;  %692 = vmatprep.mubr.f32.mxu1 %v399_v34  ;;  %v367_v33 = vld [vmem:[%s2783_s9 + $0x108] sm:$0xff] }
  0x82   : > { %533 = vmatmul.mubr.f32.vlgmr.msra.gmra.mxu0 %v334_v35  ;;  %693 = vmatmul.mubr.f32.vlgmr.msra.gmra.mxu1 %v398_v36  ;;  %v431_v34 = vld [vmem:[%s2783_s9 + $0x308] sm:$0xff]  ;;  %v366_v35 = vld [vmem:[%s2783_s9 + $0x100] sm:$0xff] }
  0x83   : > { %537 = vmatprep.mubr.f32.mxu0 %v337_v37  ;;  %697 = vmatprep.mubr.f32.mxu1 %v401_v38  ;;  %v430_v36 = vld [vmem:[%s2783_s9 + $0x300] sm:$0xff]  ;;  %v369_v37 = vld [vmem:[%s2783_s9 + $0x118] sm:$0xff] }
  0x84   : > { %v433_v38 = vld [vmem:[%s2783_s9 + $0x318] sm:$0xff] }
  0x86   : > { %538 = vmatmul.mubr.f32.gmra.mxu0 %v336_v39  ;;  %698 = vmatmul.mubr.f32.gmra.mxu1 %v400_v40  ;;  %v368_v39 = vld [vmem:[%s2783_s9 + $0x110] sm:$0xff] }
  0x87   : > { %542 = vmatprep.mubr.f32.mxu0 %v339_v41  ;;  %702 = vmatprep.mubr.f32.mxu1 %v403_v42  ;;  %v432_v40 = vld [vmem:[%s2783_s9 + $0x310] sm:$0xff]  ;;  %v371_v41 = vld [vmem:[%s2783_s9 + $0x128] sm:$0xff] }
  0x88   : > { %v435_v42 = vld [vmem:[%s2783_s9 + $0x328] sm:$0xff] }
  0x8a   : > { %543 = vmatmul.mubr.f32.gmra.mxu0 %v338_v43  ;;  %703 = vmatmul.mubr.f32.gmra.mxu1 %v402_v44  ;;  %v370_v43 = vld [vmem:[%s2783_s9 + $0x120] sm:$0xff] }
  0x8b   : > { %547 = vmatprep.mubr.f32.mxu0 %v341_v45  ;;  %707 = vmatprep.mubr.f32.mxu1 %v405_v46  ;;  %v434_v44 = vld [vmem:[%s2783_s9 + $0x320] sm:$0xff]  ;;  %v373_v45 = vld [vmem:[%s2783_s9 + $0x138] sm:$0xff] }
  0x8c   : > { %v437_v46 = vld [vmem:[%s2783_s9 + $0x338] sm:$0xff] }
  0x8e   : > { %548 = vmatmul.mubr.f32.gmra.mxu0 %v340_v47  ;;  %708 = vmatmul.mubr.f32.gmra.mxu1 %v404_v48  ;;  %v372_v47 = vld [vmem:[%s2783_s9 + $0x130] sm:$0xff] }
  0x8f   : > { %552 = vmatprep.mubr.f32.mxu0 %v343_v49  ;;  %712 = vmatprep.mubr.f32.mxu1 %v407_v50  ;;  %v436_v48 = vld [vmem:[%s2783_s9 + $0x330] sm:$0xff]  ;;  %v375_v49 = vld [vmem:[%s2783_s9 + $0x148] sm:$0xff] }
  0x90   : > { %v439_v50 = vld [vmem:[%s2783_s9 + $0x348] sm:$0xff] }
  0x92   : > { %553 = vmatmul.mubr.f32.gmra.mxu0 %v342_v51  ;;  %713 = vmatmul.mubr.f32.gmra.mxu1 %v406_v52  ;;  %v374_v51 = vld [vmem:[%s2783_s9 + $0x140] sm:$0xff] }
  0x93   : > { %557 = vmatprep.mubr.f32.mxu0 %v345_v53  ;;  %717 = vmatprep.mubr.f32.mxu1 %v409_v54  ;;  %v438_v52 = vld [vmem:[%s2783_s9 + $0x340] sm:$0xff]  ;;  %v377_v53 = vld [vmem:[%s2783_s9 + $0x158] sm:$0xff] }
  0x94   : > { %v441_v54 = vld [vmem:[%s2783_s9 + $0x358] sm:$0xff] }
  0x96   : > { %558 = vmatmul.mubr.f32.gmra.mxu0 %v344_v55  ;;  %718 = vmatmul.mubr.f32.gmra.mxu1 %v408_v56  ;;  %v376_v55 = vld [vmem:[%s2783_s9 + $0x150] sm:$0xff] }
  0x97   : > { %562 = vmatprep.mubr.f32.mxu0 %v347_v57  ;;  %722 = vmatprep.mubr.f32.mxu1 %v411_v58  ;;  %v440_v56 = vld [vmem:[%s2783_s9 + $0x350] sm:$0xff]  ;;  %v379_v57 = vld [vmem:[%s2783_s9 + $0x168] sm:$0xff] }
  0x98   : > { %v443_v58 = vld [vmem:[%s2783_s9 + $0x368] sm:$0xff] }
  0x9a   : > { %563 = vmatmul.mubr.f32.gmra.mxu0 %v346_v59  ;;  %723 = vmatmul.mubr.f32.gmra.mxu1 %v410_v60  ;;  %v378_v59 = vld [vmem:[%s2783_s9 + $0x160] sm:$0xff] }
  0x9b   : > { %567 = vmatprep.mubr.f32.mxu0 %v349_v61  ;;  %727 = vmatprep.mubr.f32.mxu1 %v413_v62  ;;  %v442_v60 = vld [vmem:[%s2783_s9 + $0x360] sm:$0xff]  ;;  %v381_v61 = vld [vmem:[%s2783_s9 + $0x178] sm:$0xff] }
  0x9c   : > { %v445_v62 = vld [vmem:[%s2783_s9 + $0x378] sm:$0xff] }
  0x9e   : > { %568 = vmatmul.mubr.f32.gmra.mxu0 %v348_v63  ;;  %728 = vmatmul.mubr.f32.gmra.mxu1 %v412_v0  ;;  %v380_v63 = vld [vmem:[%s2783_s9 + $0x170] sm:$0xff] }
  0x9f   : > { %572 = vmatprep.mubr.f32.mxu0 %v351_v1  ;;  %732 = vmatprep.mubr.f32.mxu1 %v415_v2  ;;  %v444_v0 = vld [vmem:[%s2783_s9 + $0x370] sm:$0xff]  ;;  %v383_v1 = vld [vmem:[%s2783_s9 + $0x188] sm:$0xff] }
  0xa0   : > { %v447_v2 = vld [vmem:[%s2783_s9 + $0x388] sm:$0xff] }
  0xa2   : > { %573 = vmatmul.mubr.f32.gmra.mxu0 %v350_v3  ;;  %733 = vmatmul.mubr.f32.gmra.mxu1 %v414_v4  ;;  %v382_v3 = vld [vmem:[%s2783_s9 + $0x180] sm:$0xff] }
  0xa3   : > { %577 = vmatprep.mubr.f32.mxu0 %v353_v5  ;;  %737 = vmatprep.mubr.f32.mxu1 %v417_v6  ;;  %v446_v4 = vld [vmem:[%s2783_s9 + $0x380] sm:$0xff]  ;;  %v385_v5 = vld [vmem:[%s2783_s9 + $0x198] sm:$0xff] }
  0xa4   : > { %v449_v6 = vld [vmem:[%s2783_s9 + $0x398] sm:$0xff] }
  0xa6   : > { %578 = vmatmul.mubr.f32.gmra.mxu0 %v352_v7  ;;  %738 = vmatmul.mubr.f32.gmra.mxu1 %v416_v8  ;;  %v384_v7 = vld [vmem:[%s2783_s9 + $0x190] sm:$0xff] }
  0xa7   : > { %582 = vmatprep.mubr.f32.mxu0 %v355_v9  ;;  %742 = vmatprep.mubr.f32.mxu1 %v419_v10  ;;  %v448_v8 = vld [vmem:[%s2783_s9 + $0x390] sm:$0xff]  ;;  %v387_v9 = vld [vmem:[%s2783_s9 + $0x1a8] sm:$0xff] }
  0xa8   : > { %v451_v10 = vld [vmem:[%s2783_s9 + $0x3a8] sm:$0xff] }
  0xaa   : > { %583 = vmatmul.mubr.f32.gmra.mxu0 %v354_v11  ;;  %743 = vmatmul.mubr.f32.gmra.mxu1 %v418_v12  ;;  %v386_v11 = vld [vmem:[%s2783_s9 + $0x1a0] sm:$0xff] }
  0xab   : > { %587 = vmatprep.mubr.f32.mxu0 %v357_v13  ;;  %747 = vmatprep.mubr.f32.mxu1 %v421_v14  ;;  %v450_v12 = vld [vmem:[%s2783_s9 + $0x3a0] sm:$0xff]  ;;  %v389_v13 = vld [vmem:[%s2783_s9 + $0x1b8] sm:$0xff] }
  0xac   : > { %v453_v14 = vld [vmem:[%s2783_s9 + $0x3b8] sm:$0xff] }
  0xae   : > { %588 = vmatmul.mubr.f32.gmra.mxu0 %v356_v15  ;;  %748 = vmatmul.mubr.f32.gmra.mxu1 %v420_v16  ;;  %v388_v15 = vld [vmem:[%s2783_s9 + $0x1b0] sm:$0xff] }
  0xaf   : > { %592 = vmatprep.mubr.f32.mxu0 %v359_v17  ;;  %752 = vmatprep.mubr.f32.mxu1 %v423_v18  ;;  %v452_v16 = vld [vmem:[%s2783_s9 + $0x3b0] sm:$0xff]  ;;  %v391_v17 = vld [vmem:[%s2783_s9 + $0x1c8] sm:$0xff] }
  0xb0   : > { %v455_v18 = vld [vmem:[%s2783_s9 + $0x3c8] sm:$0xff] }
  0xb2   : > { %593 = vmatmul.mubr.f32.gmra.mxu0 %v358_v19  ;;  %753 = vmatmul.mubr.f32.gmra.mxu1 %v422_v20  ;;  %v390_v19 = vld [vmem:[%s2783_s9 + $0x1c0] sm:$0xff] }
  0xb3   : > { %597 = vmatprep.mubr.f32.mxu0 %v361_v21  ;;  %757 = vmatprep.mubr.f32.mxu1 %v425_v22  ;;  %v454_v20 = vld [vmem:[%s2783_s9 + $0x3c0] sm:$0xff]  ;;  %v393_v21 = vld [vmem:[%s2783_s9 + $0x1d8] sm:$0xff] }
  0xb4   : > { %v457_v22 = vld [vmem:[%s2783_s9 + $0x3d8] sm:$0xff] }
  0xb6   : > { %598 = vmatmul.mubr.f32.gmra.mxu0 %v360_v23  ;;  %758 = vmatmul.mubr.f32.gmra.mxu1 %v424_v24  ;;  %v392_v23 = vld [vmem:[%s2783_s9 + $0x1d0] sm:$0xff] }
  0xb7   : > { %602 = vmatprep.mubr.f32.mxu0 %v363_v25  ;;  %762 = vmatprep.mubr.f32.mxu1 %v427_v26  ;;  %v456_v24 = vld [vmem:[%s2783_s9 + $0x3d0] sm:$0xff]  ;;  %v395_v25 = vld [vmem:[%s2783_s9 + $0x1e8] sm:$0xff] }
  0xb8   : > { %v459_v26 = vld [vmem:[%s2783_s9 + $0x3e8] sm:$0xff] }
  0xba   : > { %603 = vmatmul.mubr.f32.gmra.mxu0 %v362_v27  ;;  %763 = vmatmul.mubr.f32.gmra.mxu1 %v426_v28  ;;  %v394_v27 = vld [vmem:[%s2783_s9 + $0x1e0] sm:$0xff] }
  0xbb   : > { %607 = vmatprep.mubr.f32.mxu0 %v365_v29  ;;  %767 = vmatprep.mubr.f32.mxu1 %v429_v30  ;;  %v458_v28 = vld [vmem:[%s2783_s9 + $0x3e0] sm:$0xff]  ;;  %v397_v29 = vld [vmem:[%s2783_s9 + $0x1f8] sm:$0xff] }
  0xbc   : > { %v461_v30 = vld [vmem:[%s2783_s9 + $0x3f8] sm:$0xff] }
  0xbe   : > { %608 = vmatmul.mubr.f32.gmra.mxu0 %v364_v31  ;;  %768 = vmatmul.mubr.f32.gmra.mxu1 %v428_v32  ;;  %v396_v31 = vld [vmem:[%s2783_s9 + $0x1f0] sm:$0xff] }
  0xbf   : > { %612 = vmatprep.mubr.f32.mxu0 %v367_v33  ;;  %772 = vmatprep.mubr.f32.mxu1 %v431_v34  ;;  %v460_v32 = vld [vmem:[%s2783_s9 + $0x3f0] sm:$0xff]  ;;  %v2988_v33 = vld [vmem:[%s3822_s2] ss:$0 sm:$0xff] }
  0xc2   : > { %613 = vmatmul.mubr.f32.gmra.mxu0 %v366_v35  ;;  %773 = vmatmul.mubr.f32.gmra.mxu1 %v430_v36 }
  0xc3   : > { %617 = vmatprep.mubr.f32.mxu0 %v369_v37  ;;  %777 = vmatprep.mubr.f32.mxu1 %v433_v38 }
  0xc6   : > { %618 = vmatmul.mubr.f32.gmra.mxu0 %v368_v39  ;;  %778 = vmatmul.mubr.f32.gmra.mxu1 %v432_v40  ;;  %v2995_v40 = vld [vmem:[%s3823_s3] ss:$0 sm:$0xff] }
  0xc7   : > { %622 = vmatprep.mubr.f32.mxu0 %v371_v41  ;;  %782 = vmatprep.mubr.f32.mxu1 %v435_v42 }
  0xca   : > { %623 = vmatmul.mubr.f32.gmra.mxu0 %v370_v43  ;;  %783 = vmatmul.mubr.f32.gmra.mxu1 %v434_v44 }
  0xcb   : > { %627 = vmatprep.mubr.f32.mxu0 %v373_v45  ;;  %787 = vmatprep.mubr.f32.mxu1 %v437_v46 }
  0xce   : > { %628 = vmatmul.mubr.f32.gmra.mxu0 %v372_v47  ;;  %788 = vmatmul.mubr.f32.gmra.mxu1 %v436_v48 }
  0xcf   : > { %632 = vmatprep.mubr.f32.mxu0 %v375_v49  ;;  %792 = vmatprep.mubr.f32.mxu1 %v439_v50 }
  0xd2   : > { %633 = vmatmul.mubr.f32.gmra.mxu0 %v374_v51  ;;  %793 = vmatmul.mubr.f32.gmra.mxu1 %v438_v52 }
  0xd3   : > { %637 = vmatprep.mubr.f32.mxu0 %v377_v53  ;;  %797 = vmatprep.mubr.f32.mxu1 %v441_v54 }
  0xd6   : > { %638 = vmatmul.mubr.f32.gmra.mxu0 %v376_v55  ;;  %798 = vmatmul.mubr.f32.gmra.mxu1 %v440_v56 }
  0xd7   : > { %642 = vmatprep.mubr.f32.mxu0 %v379_v57  ;;  %802 = vmatprep.mubr.f32.mxu1 %v443_v58 }
  0xda   : > { %643 = vmatmul.mubr.f32.gmra.mxu0 %v378_v59  ;;  %803 = vmatmul.mubr.f32.gmra.mxu1 %v442_v60 }
  0xdb   : > { %647 = vmatprep.mubr.f32.mxu0 %v381_v61  ;;  %807 = vmatprep.mubr.f32.mxu1 %v445_v62 }
  0xde   : > { %648 = vmatmul.mubr.f32.gmra.mxu0 %v380_v63  ;;  %808 = vmatmul.mubr.f32.gmra.mxu1 %v444_v0 }
  0xdf   : > { %652 = vmatprep.mubr.f32.mxu0 %v383_v1  ;;  %812 = vmatprep.mubr.f32.mxu1 %v447_v2 }
  0xe2   : > { %653 = vmatmul.mubr.f32.gmra.mxu0 %v382_v3  ;;  %813 = vmatmul.mubr.f32.gmra.mxu1 %v446_v4 }
  0xe3   : > { %657 = vmatprep.mubr.f32.mxu0 %v385_v5  ;;  %817 = vmatprep.mubr.f32.mxu1 %v449_v6 }
  0xe6   : > { %658 = vmatmul.mubr.f32.gmra.mxu0 %v384_v7  ;;  %818 = vmatmul.mubr.f32.gmra.mxu1 %v448_v8 }
  0xe7   : > { %662 = vmatprep.mubr.f32.mxu0 %v387_v9  ;;  %822 = vmatprep.mubr.f32.mxu1 %v451_v10 }
  0xea   : > { %663 = vmatmul.mubr.f32.gmra.mxu0 %v386_v11  ;;  %823 = vmatmul.mubr.f32.gmra.mxu1 %v450_v12 }
  0xeb   : > { %667 = vmatprep.mubr.f32.mxu0 %v389_v13  ;;  %827 = vmatprep.mubr.f32.mxu1 %v453_v14 }
  0xee   : > { %668 = vmatmul.mubr.f32.gmra.mxu0 %v388_v15  ;;  %828 = vmatmul.mubr.f32.gmra.mxu1 %v452_v16 }
  0xef   : > { %672 = vmatprep.mubr.f32.mxu0 %v391_v17  ;;  %832 = vmatprep.mubr.f32.mxu1 %v455_v18 }
  0xf2   : > { %673 = vmatmul.mubr.f32.gmra.mxu0 %v390_v19  ;;  %833 = vmatmul.mubr.f32.gmra.mxu1 %v454_v20 }
  0xf3   : > { %677 = vmatprep.mubr.f32.mxu0 %v393_v21  ;;  %837 = vmatprep.mubr.f32.mxu1 %v457_v22 }
  0xf6   : > { %678 = vmatmul.mubr.f32.gmra.mxu0 %v392_v23  ;;  %838 = vmatmul.mubr.f32.gmra.mxu1 %v456_v24 }
  0xf7   : > { %682 = vmatprep.mubr.f32.mxu0 %v395_v25  ;;  %842 = vmatprep.mubr.f32.mxu1 %v459_v26 }
  0xfa   : > { %683 = vmatmul.mubr.f32.gmra.mxu0 %v394_v27  ;;  %843 = vmatmul.mubr.f32.gmra.mxu1 %v458_v28 }
  0xfb   : > { %687 = vmatprep.mubr.f32.mxu0 %v397_v29  ;;  %847 = vmatprep.mubr.f32.mxu1 %v461_v30 }
  0xfe   : > { %688 = vmatmul.mubr.f32.gmra.mxu0 %v396_v31  ;;  %848 = vmatmul.mubr.f32.gmra.mxu1 %v460_v32 }
 0x142   : > { %v534_v34 = vpop.f32.mrf.mxu0  ;;  %v694_v35 = vpop.f32.mrf.mxu1 }
 0x143   : > { %v535_v36 = vadd.f32 %v2988_v33, %v534_v34  ;;  %v695_v37 = vadd.f32 %v2988_v33, %v694_v35 }
 0x144   : > { %v536_v38 = vpop.f32.mrf.mxu0  ;;  %v696_v39 = vpop.f32.mrf.mxu1 }
 0x145   : > { %v853_v41 = vmax.f32 %v535_v36, 0.0  ;;  %v885_v42 = vmax.f32 %v695_v37, 0.0 }
 0x146   : > { %v539_v43 = vpop.f32.mrf.mxu0  ;;  %v699_v44 = vpop.f32.mrf.mxu1 }
 0x147   : > { %v540_v45 = vadd.f32 %v2988_v33, %v539_v43  ;;  %v700_v46 = vadd.f32 %v2988_v33, %v699_v44  ;;  %v923_v47 = vmul.f32 %v2995_v40, %v853_v41  ;;  %v955_v51 = vmul.f32 %v2995_v40, %v885_v42 }
 0x148   : > { %v541_v48 = vpop.f32.mrf.mxu0  ;;  %v701_v49 = vpop.f32.mrf.mxu1 }
 0x149   : > { %v886_v50 = vmax.f32 %v700_v46, 0.0  ;;  %987 = vadd.xlane.f32.xlu0 %v923_v47  ;;  %v854_v54 = vmax.f32 %v540_v45, 0.0 }
 0x14a   : > { %v544_v52 = vpop.f32.mrf.mxu0  ;;  %v704_v53 = vpop.f32.mrf.mxu1 }
 0x14b   : > { %v545_v55 = vadd.f32 %v2988_v33, %v544_v52  ;;  %v705_v56 = vadd.f32 %v2988_v33, %v704_v53  ;;  %v956_v57 = vmul.f32 %v2995_v40, %v886_v50  ;;  %v924_v3 = vmul.f32 %v2995_v40, %v854_v54 }
 0x14c   : > { %v546_v58 = vpop.f32.mrf.mxu0  ;;  %v706_v59 = vpop.f32.mrf.mxu1 }
 0x14d   : > { %v855_v60 = vmax.f32 %v545_v55, 0.0  ;;  %v887_v61 = vmax.f32 %v705_v56, 0.0  ;;  %1053 = vadd.xlane.f32.xlu1 %v956_v57  ;;  %1051 = vadd.xlane.f32.xlu0 %v955_v51 }
 0x14e   : > { %v549_v62 = vpop.f32.mrf.mxu0  ;;  %v709_v63 = vpop.f32.mrf.mxu1 }
 0x14f   : > { %v550_v0 = vadd.f32 %v2988_v33, %v549_v62  ;;  %v710_v1 = vadd.f32 %v2988_v33, %v709_v63  ;;  %v925_v2 = vmul.f32 %v2995_v40, %v855_v60  ;;  %v957_v8 = vmul.f32 %v2995_v40, %v887_v61 }
 0x150   : > { %v551_v4 = vpop.f32.mrf.mxu0  ;;  %v711_v5 = vpop.f32.mrf.mxu1 }
 0x151   : > { %v856_v6 = vmax.f32 %v550_v0, 0.0  ;;  %v888_v7 = vmax.f32 %v710_v1, 0.0  ;;  %991 = vadd.xlane.f32.xlu1 %v925_v2  ;;  %989 = vadd.xlane.f32.xlu0 %v924_v3 }
 0x152   : > { %v554_v9 = vpop.f32.mrf.mxu0  ;;  %v714_v10 = vpop.f32.mrf.mxu1 }
 0x153   : > { %v555_v11 = vadd.f32 %v2988_v33, %v554_v9  ;;  %v715_v12 = vadd.f32 %v2988_v33, %v714_v10  ;;  %v926_v13 = vmul.f32 %v2995_v40, %v856_v6  ;;  %v958_v18 = vmul.f32 %v2995_v40, %v888_v7 }
 0x154   : > { %v556_v14 = vpop.f32.mrf.mxu0  ;;  %v716_v15 = vpop.f32.mrf.mxu1 }
 0x155   : > { %v857_v16 = vmax.f32 %v555_v11, 0.0  ;;  %v889_v17 = vmax.f32 %v715_v12, 0.0  ;;  %993 = vadd.xlane.f32.xlu1 %v926_v13  ;;  %1055 = vadd.xlane.f32.xlu0 %v957_v8 }
 0x156   : > { %v559_v19 = vpop.f32.mrf.mxu0  ;;  %v719_v20 = vpop.f32.mrf.mxu1 }
 0x157   : > { %v560_v21 = vadd.f32 %v2988_v33, %v559_v19  ;;  %v720_v22 = vadd.f32 %v2988_v33, %v719_v20  ;;  %v927_v23 = vmul.f32 %v2995_v40, %v857_v16  ;;  %v959_v28 = vmul.f32 %v2995_v40, %v889_v17 }
 0x158   : > { %v561_v24 = vpop.f32.mrf.mxu0  ;;  %v721_v25 = vpop.f32.mrf.mxu1 }
 0x159   : > { %v858_v26 = vmax.f32 %v560_v21, 0.0  ;;  %v890_v27 = vmax.f32 %v720_v22, 0.0  ;;  %1057 = vadd.xlane.f32.xlu1 %v958_v18  ;;  %995 = vadd.xlane.f32.xlu0 %v927_v23 }
 0x15a   : > { %v564_v29 = vpop.f32.mrf.mxu0  ;;  %v724_v30 = vpop.f32.mrf.mxu1 }
 0x15b   : > { %v565_v31 = vadd.f32 %v2988_v33, %v564_v29  ;;  %v725_v32 = vadd.f32 %v2988_v33, %v724_v30  ;;  %v928_v34 = vmul.f32 %v2995_v40, %v858_v26  ;;  %v960_v39 = vmul.f32 %v2995_v40, %v890_v27 }
 0x15c   : > { %v566_v35 = vpop.f32.mrf.mxu0  ;;  %v726_v36 = vpop.f32.mrf.mxu1 }
 0x15d   : > { %v859_v37 = vmax.f32 %v565_v31, 0.0  ;;  %v891_v38 = vmax.f32 %v725_v32, 0.0  ;;  %997 = vadd.xlane.f32.xlu1 %v928_v34  ;;  %1059 = vadd.xlane.f32.xlu0 %v959_v28 }
 0x15e   : > { %v569_v41 = vpop.f32.mrf.mxu0  ;;  %v729_v42 = vpop.f32.mrf.mxu1 }
 0x15f   : > { %v570_v43 = vadd.f32 %v2988_v33, %v569_v41  ;;  %v730_v44 = vadd.f32 %v2988_v33, %v729_v42  ;;  %v929_v45 = vmul.f32 %v2995_v40, %v859_v37  ;;  %v961_v50 = vmul.f32 %v2995_v40, %v891_v38 }
 0x160   : > { %v571_v46 = vpop.f32.mrf.mxu0  ;;  %v731_v47 = vpop.f32.mrf.mxu1 }
 0x161   : > { %v860_v48 = vmax.f32 %v570_v43, 0.0  ;;  %v892_v49 = vmax.f32 %v730_v44, 0.0  ;;  %1061 = vadd.xlane.f32.xlu1 %v960_v39  ;;  %999 = vadd.xlane.f32.xlu0 %v929_v45 }
 0x162   : > { %v574_v51 = vpop.f32.mrf.mxu0  ;;  %v734_v52 = vpop.f32.mrf.mxu1 }
 0x163   : > { %v575_v53 = vadd.f32 %v2988_v33, %v574_v51  ;;  %v735_v54 = vadd.f32 %v2988_v33, %v734_v52  ;;  %v930_v55 = vmul.f32 %v2995_v40, %v860_v48  ;;  %v962_v60 = vmul.f32 %v2995_v40, %v892_v49 }
 0x164   : > { %v576_v56 = vpop.f32.mrf.mxu0  ;;  %v736_v57 = vpop.f32.mrf.mxu1 }
 0x165   : > { %v861_v58 = vmax.f32 %v575_v53, 0.0  ;;  %v893_v59 = vmax.f32 %v735_v54, 0.0  ;;  %1001 = vadd.xlane.f32.xlu1 %v930_v55  ;;  %1063 = vadd.xlane.f32.xlu0 %v961_v50 }
 0x166   : > { %v579_v61 = vpop.f32.mrf.mxu0  ;;  %v739_v62 = vpop.f32.mrf.mxu1 }
 0x167   : > { %v580_v63 = vadd.f32 %v2988_v33, %v579_v61  ;;  %v740_v0 = vadd.f32 %v2988_v33, %v739_v62  ;;  %v931_v1 = vmul.f32 %v2995_v40, %v861_v58  ;;  %v963_v6 = vmul.f32 %v2995_v40, %v893_v59 }
 0x168   : > { %v581_v2 = vpop.f32.mrf.mxu0  ;;  %v741_v3 = vpop.f32.mrf.mxu1 }
 0x169   : > { %v862_v4 = vmax.f32 %v580_v63, 0.0  ;;  %v894_v5 = vmax.f32 %v740_v0, 0.0  ;;  %1065 = vadd.xlane.f32.xlu1 %v962_v60  ;;  %1003 = vadd.xlane.f32.xlu0 %v931_v1 }
 0x16a   : > { %v584_v7 = vpop.f32.mrf.mxu0  ;;  %v744_v8 = vpop.f32.mrf.mxu1 }
 0x16b   : > { %v585_v9 = vadd.f32 %v2988_v33, %v584_v7  ;;  %v745_v10 = vadd.f32 %v2988_v33, %v744_v8  ;;  %v932_v11 = vmul.f32 %v2995_v40, %v862_v4  ;;  %v964_v16 = vmul.f32 %v2995_v40, %v894_v5 }
 0x16c   : > { %v586_v12 = vpop.f32.mrf.mxu0  ;;  %v746_v13 = vpop.f32.mrf.mxu1 }
 0x16d   : > { %v863_v14 = vmax.f32 %v585_v9, 0.0  ;;  %v895_v15 = vmax.f32 %v745_v10, 0.0  ;;  %1005 = vadd.xlane.f32.xlu1 %v932_v11  ;;  %1067 = vadd.xlane.f32.xlu0 %v963_v6 }
 0x16e   : > { %v589_v17 = vpop.f32.mrf.mxu0  ;;  %v749_v18 = vpop.f32.mrf.mxu1 }
 0x16f   : > { %v590_v19 = vadd.f32 %v2988_v33, %v589_v17  ;;  %v750_v20 = vadd.f32 %v2988_v33, %v749_v18  ;;  %v933_v21 = vmul.f32 %v2995_v40, %v863_v14  ;;  %v965_v26 = vmul.f32 %v2995_v40, %v895_v15 }
 0x170   : > { %v591_v22 = vpop.f32.mrf.mxu0  ;;  %v751_v23 = vpop.f32.mrf.mxu1 }
 0x171   : > { %v864_v24 = vmax.f32 %v590_v19, 0.0  ;;  %v896_v25 = vmax.f32 %v750_v20, 0.0  ;;  %1069 = vadd.xlane.f32.xlu1 %v964_v16  ;;  %1007 = vadd.xlane.f32.xlu0 %v933_v21 }
 0x172   : > { %v594_v27 = vpop.f32.mrf.mxu0  ;;  %v754_v28 = vpop.f32.mrf.mxu1 }
 0x173   : > { %v595_v29 = vadd.f32 %v2988_v33, %v594_v27  ;;  %v755_v30 = vadd.f32 %v2988_v33, %v754_v28  ;;  %v934_v31 = vmul.f32 %v2995_v40, %v864_v24  ;;  %v966_v37 = vmul.f32 %v2995_v40, %v896_v25 }
 0x174   : > { %v596_v32 = vpop.f32.mrf.mxu0  ;;  %v756_v34 = vpop.f32.mrf.mxu1 }
 0x175   : > { %v865_v35 = vmax.f32 %v595_v29, 0.0  ;;  %v897_v36 = vmax.f32 %v755_v30, 0.0  ;;  %1009 = vadd.xlane.f32.xlu1 %v934_v31  ;;  %1071 = vadd.xlane.f32.xlu0 %v965_v26 }
 0x176   : > { %v599_v38 = vpop.f32.mrf.mxu0  ;;  %v759_v39 = vpop.f32.mrf.mxu1 }
 0x177   : > { %v600_v41 = vadd.f32 %v2988_v33, %v599_v38  ;;  %v760_v42 = vadd.f32 %v2988_v33, %v759_v39  ;;  %v935_v43 = vmul.f32 %v2995_v40, %v865_v35  ;;  %v967_v48 = vmul.f32 %v2995_v40, %v897_v36 }
 0x178   : > { %v601_v44 = vpop.f32.mrf.mxu0  ;;  %v761_v45 = vpop.f32.mrf.mxu1 }
 0x179   : > { %v866_v46 = vmax.f32 %v600_v41, 0.0  ;;  %v898_v47 = vmax.f32 %v760_v42, 0.0  ;;  %1073 = vadd.xlane.f32.xlu1 %v966_v37  ;;  %1011 = vadd.xlane.f32.xlu0 %v935_v43 }
 0x17a   : > { %v604_v49 = vpop.f32.mrf.mxu0  ;;  %v764_v50 = vpop.f32.mrf.mxu1 }
 0x17b   : > { %v605_v51 = vadd.f32 %v2988_v33, %v604_v49  ;;  %v765_v52 = vadd.f32 %v2988_v33, %v764_v50  ;;  %v936_v53 = vmul.f32 %v2995_v40, %v866_v46  ;;  %v968_v58 = vmul.f32 %v2995_v40, %v898_v47 }
 0x17c   : > { %v606_v54 = vpop.f32.mrf.mxu0  ;;  %v766_v55 = vpop.f32.mrf.mxu1 }
 0x17d   : > { %v867_v56 = vmax.f32 %v605_v51, 0.0  ;;  %v899_v57 = vmax.f32 %v765_v52, 0.0  ;;  %1013 = vadd.xlane.f32.xlu1 %v936_v53  ;;  %1075 = vadd.xlane.f32.xlu0 %v967_v48 }
 0x17e   : > { %v609_v59 = vpop.f32.mrf.mxu0  ;;  %v769_v60 = vpop.f32.mrf.mxu1 }
 0x17f   : > { %v610_v61 = vadd.f32 %v2988_v33, %v609_v59  ;;  %v770_v62 = vadd.f32 %v2988_v33, %v769_v60  ;;  %v937_v63 = vmul.f32 %v2995_v40, %v867_v56  ;;  %v969_v4 = vmul.f32 %v2995_v40, %v899_v57 }
 0x180   : > { %v611_v0 = vpop.f32.mrf.mxu0  ;;  %v771_v1 = vpop.f32.mrf.mxu1 }
 0x181   : > { %v868_v2 = vmax.f32 %v610_v61, 0.0  ;;  %v900_v3 = vmax.f32 %v770_v62, 0.0  ;;  %1077 = vadd.xlane.f32.xlu1 %v968_v58  ;;  %1015 = vadd.xlane.f32.xlu0 %v937_v63 }
 0x182   : > { %v614_v5 = vpop.f32.mrf.mxu0  ;;  %v774_v6 = vpop.f32.mrf.mxu1 }
 0x183   : > { %v615_v7 = vadd.f32 %v2988_v33, %v614_v5  ;;  %v775_v8 = vadd.f32 %v2988_v33, %v774_v6  ;;  %v938_v9 = vmul.f32 %v2995_v40, %v868_v2  ;;  %v970_v14 = vmul.f32 %v2995_v40, %v900_v3 }
 0x184   : > { %v616_v10 = vpop.f32.mrf.mxu0  ;;  %v776_v11 = vpop.f32.mrf.mxu1 }
 0x185   : > { %v869_v12 = vmax.f32 %v615_v7, 0.0  ;;  %v901_v13 = vmax.f32 %v775_v8, 0.0  ;;  %1017 = vadd.xlane.f32.xlu1 %v938_v9  ;;  %1079 = vadd.xlane.f32.xlu0 %v969_v4 }
 0x186   : > { %v619_v15 = vpop.f32.mrf.mxu0  ;;  %v779_v16 = vpop.f32.mrf.mxu1 }
 0x187   : > { %v620_v17 = vadd.f32 %v2988_v33, %v619_v15  ;;  %v939_v18 = vmul.f32 %v2995_v40, %v869_v12  ;;  %v780_v19 = vadd.f32 %v2988_v33, %v779_v16  ;;  %v971_v24 = vmul.f32 %v2995_v40, %v901_v13 }
 0x188   : > { %v621_v20 = vpop.f32.mrf.mxu0  ;;  %v781_v21 = vpop.f32.mrf.mxu1 }
 0x189   : > { %v870_v22 = vmax.f32 %v620_v17, 0.0  ;;  %1081 = vadd.xlane.f32.xlu1 %v970_v14  ;;  %1019 = vadd.xlane.f32.xlu0 %v939_v18  ;;  %v902_v23 = vmax.f32 %v780_v19, 0.0 }
 0x18a   : > { %v624_v25 = vpop.f32.mrf.mxu0  ;;  %v784_v26 = vpop.f32.mrf.mxu1 }
 0x18b   : > { %v625_v27 = vadd.f32 %v2988_v33, %v624_v25  ;;  %v940_v28 = vmul.f32 %v2995_v40, %v870_v22  ;;  %v785_v29 = vadd.f32 %v2988_v33, %v784_v26  ;;  %v972_v35 = vmul.f32 %v2995_v40, %v902_v23 }
 0x18c   : > { %v626_v30 = vpop.f32.mrf.mxu0  ;;  %v786_v31 = vpop.f32.mrf.mxu1 }
 0x18d   : > { %v871_v32 = vmax.f32 %v625_v27, 0.0  ;;  %1021 = vadd.xlane.f32.xlu1 %v940_v28  ;;  %1083 = vadd.xlane.f32.xlu0 %v971_v24  ;;  %v903_v34 = vmax.f32 %v785_v29, 0.0 }
 0x18e   : > { %v629_v36 = vpop.f32.mrf.mxu0  ;;  %v789_v37 = vpop.f32.mrf.mxu1 }
 0x18f   : > { %v630_v38 = vadd.f32 %v2988_v33, %v629_v36  ;;  %v941_v39 = vmul.f32 %v2995_v40, %v871_v32  ;;  %v790_v41 = vadd.f32 %v2988_v33, %v789_v37  ;;  %v973_v46 = vmul.f32 %v2995_v40, %v903_v34 }
 0x190   : > { %v631_v42 = vpop.f32.mrf.mxu0  ;;  %v791_v43 = vpop.f32.mrf.mxu1 }
 0x191   : > { %v872_v44 = vmax.f32 %v630_v38, 0.0  ;;  %1085 = vadd.xlane.f32.xlu1 %v972_v35  ;;  %1023 = vadd.xlane.f32.xlu0 %v941_v39  ;;  %v904_v45 = vmax.f32 %v790_v41, 0.0 }
 0x192   : > { %v634_v47 = vpop.f32.mrf.mxu0  ;;  %v794_v48 = vpop.f32.mrf.mxu1 }
 0x193   : > { %v635_v49 = vadd.f32 %v2988_v33, %v634_v47  ;;  %v942_v50 = vmul.f32 %v2995_v40, %v872_v44  ;;  %v795_v51 = vadd.f32 %v2988_v33, %v794_v48  ;;  %v974_v56 = vmul.f32 %v2995_v40, %v904_v45 }
 0x194   : > { %v636_v52 = vpop.f32.mrf.mxu0  ;;  %v796_v53 = vpop.f32.mrf.mxu1 }
 0x195   : > { %v873_v54 = vmax.f32 %v635_v49, 0.0  ;;  %1025 = vadd.xlane.f32.xlu1 %v942_v50  ;;  %1087 = vadd.xlane.f32.xlu0 %v973_v46  ;;  %v905_v55 = vmax.f32 %v795_v51, 0.0 }
 0x196   : > { %v639_v57 = vpop.f32.mrf.mxu0  ;;  %v799_v58 = vpop.f32.mrf.mxu1 }
 0x197   : > { %v640_v59 = vadd.f32 %v2988_v33, %v639_v57  ;;  %v943_v60 = vmul.f32 %v2995_v40, %v873_v54  ;;  %v800_v61 = vadd.f32 %v2988_v33, %v799_v58  ;;  %v975_v2 = vmul.f32 %v2995_v40, %v905_v55 }
 0x198   : > { %v641_v62 = vpop.f32.mrf.mxu0  ;;  %v801_v63 = vpop.f32.mrf.mxu1 }
 0x199   : > { %v874_v0 = vmax.f32 %v640_v59, 0.0  ;;  %1089 = vadd.xlane.f32.xlu1 %v974_v56  ;;  %1027 = vadd.xlane.f32.xlu0 %v943_v60  ;;  %v906_v1 = vmax.f32 %v800_v61, 0.0 }
 0x19a   : > { %v644_v3 = vpop.f32.mrf.mxu0  ;;  %v804_v4 = vpop.f32.mrf.mxu1 }
 0x19b   : > { %v645_v5 = vadd.f32 %v2988_v33, %v644_v3  ;;  %v944_v6 = vmul.f32 %v2995_v40, %v874_v0  ;;  %v805_v7 = vadd.f32 %v2988_v33, %v804_v4  ;;  %v976_v12 = vmul.f32 %v2995_v40, %v906_v1 }
 0x19c   : > { %v646_v8 = vpop.f32.mrf.mxu0  ;;  %v806_v9 = vpop.f32.mrf.mxu1 }
 0x19d   : > { %v875_v10 = vmax.f32 %v645_v5, 0.0  ;;  %1029 = vadd.xlane.f32.xlu1 %v944_v6  ;;  %1091 = vadd.xlane.f32.xlu0 %v975_v2  ;;  %v907_v11 = vmax.f32 %v805_v7, 0.0 }
 0x19e   : > { %v649_v13 = vpop.f32.mrf.mxu0  ;;  %v809_v14 = vpop.f32.mrf.mxu1 }
 0x19f   : > { %v650_v15 = vadd.f32 %v2988_v33, %v649_v13  ;;  %v945_v16 = vmul.f32 %v2995_v40, %v875_v10  ;;  %v810_v17 = vadd.f32 %v2988_v33, %v809_v14  ;;  %v977_v22 = vmul.f32 %v2995_v40, %v907_v11 }
 0x1a0   : > { %v651_v18 = vpop.f32.mrf.mxu0  ;;  %v811_v19 = vpop.f32.mrf.mxu1 }
 0x1a1   : > { %v876_v20 = vmax.f32 %v650_v15, 0.0  ;;  %1093 = vadd.xlane.f32.xlu1 %v976_v12  ;;  %1031 = vadd.xlane.f32.xlu0 %v945_v16  ;;  %v908_v21 = vmax.f32 %v810_v17, 0.0 }
 0x1a2   : > { %v654_v23 = vpop.f32.mrf.mxu0  ;;  %v814_v24 = vpop.f32.mrf.mxu1 }
 0x1a3   : > { %v655_v25 = vadd.f32 %v2988_v33, %v654_v23  ;;  %v946_v26 = vmul.f32 %v2995_v40, %v876_v20  ;;  %v815_v27 = vadd.f32 %v2988_v33, %v814_v24  ;;  %v978_v32 = vmul.f32 %v2995_v40, %v908_v21 }
 0x1a4   : > { %v656_v28 = vpop.f32.mrf.mxu0  ;;  %v816_v29 = vpop.f32.mrf.mxu1 }
 0x1a5   : > { %v877_v30 = vmax.f32 %v655_v25, 0.0  ;;  %1033 = vadd.xlane.f32.xlu1 %v946_v26  ;;  %1095 = vadd.xlane.f32.xlu0 %v977_v22  ;;  %v909_v31 = vmax.f32 %v815_v27, 0.0 }
 0x1a6   : > { %v659_v34 = vpop.f32.mrf.mxu0  ;;  %v819_v35 = vpop.f32.mrf.mxu1 }
 0x1a7   : > { %v660_v36 = vadd.f32 %v2988_v33, %v659_v34  ;;  %v947_v37 = vmul.f32 %v2995_v40, %v877_v30  ;;  %v820_v38 = vadd.f32 %v2988_v33, %v819_v35  ;;  %v979_v44 = vmul.f32 %v2995_v40, %v909_v31 }
 0x1a8   : > { %v661_v39 = vpop.f32.mrf.mxu0  ;;  %v821_v41 = vpop.f32.mrf.mxu1 }
 0x1a9   : > { %v878_v42 = vmax.f32 %v660_v36, 0.0  ;;  %1097 = vadd.xlane.f32.xlu1 %v978_v32  ;;  %1035 = vadd.xlane.f32.xlu0 %v947_v37  ;;  %v910_v43 = vmax.f32 %v820_v38, 0.0 }
 0x1aa   : > { %v664_v45 = vpop.f32.mrf.mxu0  ;;  %v824_v46 = vpop.f32.mrf.mxu1 }
 0x1ab   : > { %v665_v47 = vadd.f32 %v2988_v33, %v664_v45  ;;  %v948_v48 = vmul.f32 %v2995_v40, %v878_v42  ;;  %v825_v49 = vadd.f32 %v2988_v33, %v824_v46  ;;  %v980_v54 = vmul.f32 %v2995_v40, %v910_v43 }
 0x1ac   : > { %v666_v50 = vpop.f32.mrf.mxu0  ;;  %v826_v51 = vpop.f32.mrf.mxu1 }
 0x1ad   : > { %v879_v52 = vmax.f32 %v665_v47, 0.0  ;;  %1037 = vadd.xlane.f32.xlu1 %v948_v48  ;;  %1099 = vadd.xlane.f32.xlu0 %v979_v44  ;;  %v911_v53 = vmax.f32 %v825_v49, 0.0 }
 0x1ae   : > { %v669_v55 = vpop.f32.mrf.mxu0  ;;  %v829_v56 = vpop.f32.mrf.mxu1 }
 0x1af   : > { %v670_v57 = vadd.f32 %v2988_v33, %v669_v55  ;;  %v949_v58 = vmul.f32 %v2995_v40, %v879_v52  ;;  %v830_v59 = vadd.f32 %v2988_v33, %v829_v56  ;;  %v981_v0 = vmul.f32 %v2995_v40, %v911_v53 }
 0x1b0   : > { %v671_v60 = vpop.f32.mrf.mxu0  ;;  %v831_v61 = vpop.f32.mrf.mxu1 }
 0x1b1   : > { %v880_v62 = vmax.f32 %v670_v57, 0.0  ;;  %1101 = vadd.xlane.f32.xlu1 %v980_v54  ;;  %1039 = vadd.xlane.f32.xlu0 %v949_v58  ;;  %v912_v63 = vmax.f32 %v830_v59, 0.0 }
 0x1b2   : > { %v674_v1 = vpop.f32.mrf.mxu0  ;;  %v834_v2 = vpop.f32.mrf.mxu1 }
 0x1b3   : > { %v675_v3 = vadd.f32 %v2988_v33, %v674_v1  ;;  %v950_v4 = vmul.f32 %v2995_v40, %v880_v62  ;;  %v835_v5 = vadd.f32 %v2988_v33, %v834_v2  ;;  %v982_v10 = vmul.f32 %v2995_v40, %v912_v63 }
 0x1b4   : > { %v676_v6 = vpop.f32.mrf.mxu0  ;;  %v836_v7 = vpop.f32.mrf.mxu1 }
 0x1b5   : > { %v881_v8 = vmax.f32 %v675_v3, 0.0  ;;  %1041 = vadd.xlane.f32.xlu1 %v950_v4  ;;  %1103 = vadd.xlane.f32.xlu0 %v981_v0  ;;  %v913_v9 = vmax.f32 %v835_v5, 0.0 }
 0x1b6   : > { %v679_v11 = vpop.f32.mrf.mxu0  ;;  %v839_v12 = vpop.f32.mrf.mxu1 }
 0x1b7   : > { %v680_v13 = vadd.f32 %v2988_v33, %v679_v11  ;;  %v951_v14 = vmul.f32 %v2995_v40, %v881_v8  ;;  %v840_v15 = vadd.f32 %v2988_v33, %v839_v12  ;;  %v983_v20 = vmul.f32 %v2995_v40, %v913_v9 }
 0x1b8   : > { %v681_v16 = vpop.f32.mrf.mxu0  ;;  %v841_v17 = vpop.f32.mrf.mxu1 }
 0x1b9   : > { %v882_v18 = vmax.f32 %v680_v13, 0.0  ;;  %1105 = vadd.xlane.f32.xlu1 %v982_v10  ;;  %1043 = vadd.xlane.f32.xlu0 %v951_v14  ;;  %v914_v19 = vmax.f32 %v840_v15, 0.0 }
 0x1ba   : > { %v684_v21 = vpop.f32.mrf.mxu0  ;;  %v844_v22 = vpop.f32.mrf.mxu1 }
 0x1bb   : > { %v685_v23 = vadd.f32 %v2988_v33, %v684_v21  ;;  %v952_v24 = vmul.f32 %v2995_v40, %v882_v18  ;;  %v845_v25 = vadd.f32 %v2988_v33, %v844_v22  ;;  %v984_v30 = vmul.f32 %v2995_v40, %v914_v19 }
 0x1bc   : > { %v686_v26 = vpop.f32.mrf.mxu0  ;;  %v846_v27 = vpop.f32.mrf.mxu1 }
 0x1bd   : > { %v883_v28 = vmax.f32 %v685_v23, 0.0  ;;  %1045 = vadd.xlane.f32.xlu1 %v952_v24  ;;  %1107 = vadd.xlane.f32.xlu0 %v983_v20  ;;  %v915_v29 = vmax.f32 %v845_v25, 0.0 }
 0x1be   : > { %v689_v31 = vpop.f32.mrf.mxu0  ;;  %v849_v32 = vpop.f32.mrf.mxu1 }
 0x1bf   : > { %v690_v34 = vadd.f32 %v2988_v33, %v689_v31  ;;  %v953_v35 = vmul.f32 %v2995_v40, %v883_v28  ;;  %v850_v36 = vadd.f32 %v2988_v33, %v849_v32  ;;  %v985_v42 = vmul.f32 %v2995_v40, %v915_v29 }
 0x1c0   : > { %v691_v37 = vpop.f32.mrf.mxu0  ;;  %v851_v38 = vpop.f32.mrf.mxu1 }
 0x1c1   : > { %v884_v39 = vmax.f32 %v690_v34, 0.0  ;;  %1109 = vadd.xlane.f32.xlu1 %v984_v30  ;;  %1047 = vadd.xlane.f32.xlu0 %v953_v35  ;;  %v916_v41 = vmax.f32 %v850_v36, 0.0 }
 0x1c3   : > { %v954_v43 = vmul.f32 %v2995_v40, %v884_v39  ;;  %v986_v44 = vmul.f32 %v2995_v40, %v916_v41 }
 0x1c5   : > { %1049 = vadd.xlane.f32.xlu1 %v954_v43  ;;  %1111 = vadd.xlane.f32.xlu0 %v985_v42 }
 0x1c9   : > { %1113 = vadd.xlane.f32.xlu1 %v986_v44 }
 0x1d2   : > { %v988_v45 = vpop.xlane.xlu0 %987 }
 0x1d6   : > { %v1054_v46 = vpop.xlane.xlu1 %1053  ;;  %v1052_v47 = vpop.xlane.xlu0 %1051 }
 0x1da   : > { %v992_v48 = vpop.xlane.xlu1 %991  ;;  %v990_v33 = vpop.xlane.xlu0 %989 }
 0x1de   : > { %v994_v49 = vpop.xlane.xlu1 %993  ;;  %v1056_v50 = vpop.xlane.xlu0 %1055 }
 0x1e2   : > { %v1058_v51 = vpop.xlane.xlu1 %1057  ;;  %v996_v52 = vpop.xlane.xlu0 %995 }
 0x1e6   : > { %v998_v53 = vpop.xlane.xlu1 %997  ;;  %v1060_v54 = vpop.xlane.xlu0 %1059 }
 0x1ea   : > { %v3123_v55 = vpop.xlane.xlu1 %1061  ;;  %v3125_v56 = vpop.xlane.xlu0 %999 }
 0x1ee   : > { %v3127_v57 = vpop.xlane.xlu1 %1001  ;;  %v3129_v58 = vpop.xlane.xlu0 %1063 }
 0x1f2   : > { %v3131_v40 = vpop.xlane.xlu1 %1065  ;;  %v3133_v59 = vpop.xlane.xlu0 %1003 }
 0x1f6   : > { %v3135_v60 = vpop.xlane.xlu1 %1005  ;;  %v3137_v61 = vpop.xlane.xlu0 %1067 }
 0x1fa   : > { %v3139_v62 = vpop.xlane.xlu1 %1069  ;;  %v3141_v63 = vpop.xlane.xlu0 %1007 }
 0x1fe   : > { %v3143_v0 = vpop.xlane.xlu1 %1009  ;;  %v3145_v1 = vpop.xlane.xlu0 %1071 }
 0x202   : > { %v3147_v2 = vpop.xlane.xlu1 %1073  ;;  %v3149_v3 = vpop.xlane.xlu0 %1011 }
 0x206   : > { %v3151_v4 = vpop.xlane.xlu1 %1013  ;;  %v3153_v5 = vpop.xlane.xlu0 %1075 }
 0x20a   : > { %v3155_v6 = vpop.xlane.xlu1 %1077  ;;  %v3157_v7 = vpop.xlane.xlu0 %1015 }
 0x20e   : > { %v3159_v8 = vpop.xlane.xlu1 %1017  ;;  %v3161_v9 = vpop.xlane.xlu0 %1079 }
 0x212   : > { %v3163_v10 = vpop.xlane.xlu1 %1081  ;;  %v1020_v11 = vpop.xlane.xlu0 %1019 }
 0x213   : > { %v1116_v12 = vsel %vm1115_vm0, %v988_v45, %v1020_v11 }
 0x214   : > { %v1133_v15 = vsel %vm1132_vm1, %v1116_v12, %v1052_v47 }
 0x216   : > { %v1022_v13 = vpop.xlane.xlu1 %1021  ;;  %v1084_v14 = vpop.xlane.xlu0 %1083 }
 0x217   : > { %v1117_v16 = vsel %vm1115_vm0, %v990_v33, %v1022_v13  ;;  %v3169_v17 = vsel %vm1149_vm2, %v1133_v15, %v1084_v14 }
 0x218   : > { %v1167_v18 = vsel %vm1166_vm3, %v3169_v17, -inf  ;;  %v1134_v21 = vsel %vm1132_vm1, %v1117_v16, %v1054_v46 }
 0x219   : > { %1168 = vmax.xlane.f32.xlu0 %v1167_v18 }
 0x21a   : > { %v1086_v19 = vpop.xlane.xlu1 %1085  ;;  %v1024_v20 = vpop.xlane.xlu0 %1023 }
 0x21b   : > { %v1118_v22 = vsel %vm1115_vm0, %v992_v48, %v1024_v20  ;;  %v3176_v23 = vsel %vm1149_vm2, %v1134_v21, %v1086_v19 }
 0x21c   : > { %v1170_v24 = vsel %vm1166_vm3, %v3176_v23, -inf  ;;  %v1135_v27 = vsel %vm1132_vm1, %v1118_v22, %v1056_v50 }
 0x21d   : > { %1171 = vmax.xlane.f32.xlu1 %v1170_v24 }
 0x21e   : > { %v1026_v25 = vpop.xlane.xlu1 %1025  ;;  %v1088_v26 = vpop.xlane.xlu0 %1087 }
 0x21f   : > { %v1119_v28 = vsel %vm1115_vm0, %v994_v49, %v1026_v25  ;;  %v3183_v29 = vsel %vm1149_vm2, %v1135_v27, %v1088_v26 }
 0x220   : > { %v1173_v30 = vsel %vm1166_vm3, %v3183_v29, -inf  ;;  %v1136_v34 = vsel %vm1132_vm1, %v1119_v28, %v1058_v51 }
 0x221   : > { %1174 = vmax.xlane.f32.xlu0 %v1173_v30 }
 0x222   : > { %v1090_v31 = vpop.xlane.xlu1 %1089  ;;  %v1028_v32 = vpop.xlane.xlu0 %1027 }
 0x223   : > { %v1120_v35 = vsel %vm1115_vm0, %v996_v52, %v1028_v32  ;;  %v3190_v36 = vsel %vm1149_vm2, %v1136_v34, %v1090_v31 }
 0x224   : > { %v1176_v37 = vsel %vm1166_vm3, %v3190_v36, -inf  ;;  %v1137_v41 = vsel %vm1132_vm1, %v1120_v35, %v1060_v54 }
 0x225   : > { %1177 = vmax.xlane.f32.xlu1 %v1176_v37 }
 0x226   : > { %v1030_v38 = vpop.xlane.xlu1 %1029  ;;  %v1092_v39 = vpop.xlane.xlu0 %1091 }
 0x227   : > { %v1121_v42 = vsel %vm1115_vm0, %v998_v53, %v1030_v38  ;;  %v3197_v43 = vsel %vm1149_vm2, %v1137_v41, %v1092_v39 }
 0x228   : > { %v1179_v44 = vsel %vm1166_vm3, %v3197_v43, -inf  ;;  %v1138_v47 = vsel %vm1132_vm1, %v1121_v42, %v3123_v55 }
 0x229   : > { %1180 = vmax.xlane.f32.xlu0 %v1179_v44 }
 0x22a   : > { %v1094_v45 = vpop.xlane.xlu1 %1093  ;;  %v1032_v46 = vpop.xlane.xlu0 %1031 }
 0x22b   : > { %v1122_v48 = vsel %vm1115_vm0, %v3125_v56, %v1032_v46  ;;  %v3206_v33 = vsel %vm1149_vm2, %v1138_v47, %v1094_v45 }
 0x22c   : > { %v1182_v49 = vsel %vm1166_vm3, %v3206_v33, -inf  ;;  %v1139_v52 = vsel %vm1132_vm1, %v1122_v48, %v3129_v58 }
 0x22d   : > { %1183 = vmax.xlane.f32.xlu1 %v1182_v49 }
 0x22e   : > { %v1034_v50 = vpop.xlane.xlu1 %1033  ;;  %v1096_v51 = vpop.xlane.xlu0 %1095 }
 0x22f   : > { %v1123_v53 = vsel %vm1115_vm0, %v3127_v57, %v1034_v50  ;;  %v3215_v54 = vsel %vm1149_vm2, %v1139_v52, %v1096_v51 }
 0x230   : > { %v1185_v55 = vsel %vm1166_vm3, %v3215_v54, -inf  ;;  %v1140_v12 = vsel %vm1132_vm1, %v1123_v53, %v3131_v40 }
 0x231   : > { %1186 = vmax.xlane.f32.xlu0 %v1185_v55 }
 0x232   : > { %v1098_v56 = vpop.xlane.xlu1 %1097  ;;  %v1036_v11 = vpop.xlane.xlu0 %1035 }
 0x233   : > { %v1124_v13 = vsel %vm1115_vm0, %v3133_v59, %v1036_v11  ;;  %v3224_v58 = vsel %vm1149_vm2, %v1140_v12, %v1098_v56 }
 0x234   : > { %v1188_v57 = vsel %vm1166_vm3, %v3224_v58, -inf  ;;  %v1141_v16 = vsel %vm1132_vm1, %v1124_v13, %v3137_v61 }
 0x235   : > { %1189 = vmax.xlane.f32.xlu1 %v1188_v57 }
 0x236   : > { %v1038_v14 = vpop.xlane.xlu1 %1037  ;;  %v1100_v15 = vpop.xlane.xlu0 %1099 }
 0x237   : > { %v1125_v18 = vsel %vm1115_vm0, %v3135_v60, %v1038_v14  ;;  %v3233_v40 = vsel %vm1149_vm2, %v1141_v16, %v1100_v15 }
 0x238   : > { %v1191_v59 = vsel %vm1166_vm3, %v3233_v40, -inf  ;;  %v1142_v21 = vsel %vm1132_vm1, %v1125_v18, %v3139_v62 }
 0x239   : > { %1192 = vmax.xlane.f32.xlu0 %v1191_v59 }
 0x23a   : > { %v1102_v19 = vpop.xlane.xlu1 %1101  ;;  %v1040_v20 = vpop.xlane.xlu0 %1039 }
 0x23b   : > { %v1126_v22 = vsel %vm1115_vm0, %v3141_v63, %v1040_v20  ;;  %v3242_v61 = vsel %vm1149_vm2, %v1142_v21, %v1102_v19 }
 0x23c   : > { %v1194_v60 = vsel %vm1166_vm3, %v3242_v61, -inf  ;;  %v1143_v26 = vsel %vm1132_vm1, %v1126_v22, %v3145_v1 }
 0x23d   : > { %1195 = vmax.xlane.f32.xlu1 %v1194_v60 }
 0x23e   : > { %v1042_v24 = vpop.xlane.xlu1 %1041  ;;  %v1104_v25 = vpop.xlane.xlu0 %1103 }
 0x23f   : > { %v1127_v27 = vsel %vm1115_vm0, %v3143_v0, %v1042_v24  ;;  %v3251_v62 = vsel %vm1149_vm2, %v1143_v26, %v1104_v25 }
 0x240   : > { %v1197_v63 = vsel %vm1166_vm3, %v3251_v62, -inf  ;;  %v1144_v31 = vsel %vm1132_vm1, %v1127_v27, %v3147_v2 }
 0x241   : > { %1198 = vmax.xlane.f32.xlu0 %v1197_v63 }
 0x242   : > { %v1106_v28 = vpop.xlane.xlu1 %1105  ;;  %v1044_v30 = vpop.xlane.xlu0 %1043 }
 0x243   : > { %v1128_v32 = vsel %vm1115_vm0, %v3149_v3, %v1044_v30  ;;  %v3260_v1 = vsel %vm1149_vm2, %v1144_v31, %v1106_v28 }
 0x244   : > { %v1200_v0 = vsel %vm1166_vm3, %v3260_v1, -inf  ;;  %v1145_v37 = vsel %vm1132_vm1, %v1128_v32, %v3153_v5 }
 0x245   : > { %1201 = vmax.xlane.f32.xlu1 %v1200_v0 }
 0x246   : > { %v1046_v34 = vpop.xlane.xlu1 %1045  ;;  %v1108_v35 = vpop.xlane.xlu0 %1107 }
 0x247   : > { %v1129_v38 = vsel %vm1115_vm0, %v3151_v4, %v1046_v34  ;;  %v3269_v2 = vsel %vm1149_vm2, %v1145_v37, %v1108_v35 }
 0x248   : > { %v1203_v3 = vsel %vm1166_vm3, %v3269_v2, -inf  ;;  %v1146_v42 = vsel %vm1132_vm1, %v1129_v38, %v3155_v6 }
 0x249   : > { %1204 = vmax.xlane.f32.xlu0 %v1203_v3 }
 0x24a   : > { %v1110_v39 = vpop.xlane.xlu1 %1109  ;;  %v1048_v41 = vpop.xlane.xlu0 %1047 }
 0x24b   : > { %v1130_v44 = vsel %vm1115_vm0, %v3157_v7, %v1048_v41  ;;  %v3278_v5 = vsel %vm1149_vm2, %v1146_v42, %v1110_v39 }
 0x24c   : > { %v1206_v4 = vsel %vm1166_vm3, %v3278_v5, -inf  ;;  %v1147_v47 = vsel %vm1132_vm1, %v1130_v44, %v3161_v9  ;;  %v2644_v44 = vmov 1  }
 0x24d   : > { %1207 = vmax.xlane.f32.xlu1 %v1206_v4 }
 0x24e   : > { %v1050_v45 = vpop.xlane.xlu1 %1049  ;;  %v1112_v46 = vpop.xlane.xlu0 %1111  ;;  %2412 = vset.pattern.permute.xlu1 %v2644_v44 }
 0x24f   : > { %v1131_v48 = vsel %vm1115_vm0, %v3159_v8, %v1050_v45  ;;  %v3287_v6 = vsel %vm1149_vm2, %v1147_v47, %v1112_v46 }
 0x250   : > { %v1209_v7 = vsel %vm1166_vm3, %v3287_v6, -inf  ;;  %v1148_v50 = vsel %vm1132_vm1, %v1131_v48, %v3163_v10 }
 0x251   : > { %1210 = vmax.xlane.f32.xlu0 %v1209_v7 }
 0x252   : > { %v1114_v49 = vpop.xlane.xlu1 %1113 }
 0x253   : > { %v3294_v51 = vsel %vm1149_vm2, %v1148_v50, %v1114_v49 }
 0x254   : > { %v1212_v9 = vsel %vm1166_vm3, %v3294_v51, -inf }
 0x255   : > { %1213 = vmax.xlane.f32.xlu1 %v1212_v9 }
 0x2a2   : > { %v1169_v52 = vpop.xlane.xlu0 %1168 }
 0x2a3   : > { %v1215_v8 = vsub.f32 %v3169_v17, %v1169_v52 }
 0x2a5   : > { %v1231_v53 = vmul.f32 1.442695, %v1215_v8 }
 0x2a6   : > { %v1172_v55 = vpop.xlane.xlu1 %1171 }
 0x2a7   : > { %2475 = vpow2.f32 %v1231_v53  ;;  %v1216_v56 = vsub.f32 %v3176_v23, %v1172_v55 }
 0x2a9   : > { %v1233_v11 = vmul.f32 1.442695, %v1216_v56 }
 0x2aa   : > { %v1175_v12 = vpop.xlane.xlu0 %1174 }
 0x2ab   : > { %2477 = vpow2.f32 %v1233_v11  ;;  %v1217_v10 = vsub.f32 %v3183_v29, %v1175_v12 }
 0x2ad   : > { %v1235_v13 = vmul.f32 1.442695, %v1217_v10 }
 0x2ae   : > { %v1178_v57 = vpop.xlane.xlu1 %1177 }
 0x2af   : > { %2479 = vpow2.f32 %v1235_v13  ;;  %v1218_v14 = vsub.f32 %v3190_v36, %v1178_v57 }
 0x2b1   : > { %v1237_v15 = vmul.f32 1.442695, %v1218_v14 }
 0x2b2   : > { %v1181_v16 = vpop.xlane.xlu0 %1180 }
 0x2b3   : > { %2481 = vpow2.f32 %v1237_v15  ;;  %v1219_v17 = vsub.f32 %v3197_v43, %v1181_v16 }
 0x2b4   : > { %v3303_v18 = vpop.eup %2475 }
 0x2b5   : > { %v1239_v59 = vmul.f32 1.442695, %v1219_v17  ;;  %v1263_v23 = vsel %vm1166_vm3, %v3303_v18, 0.0 }
 0x2b6   : > { %v1184_v19 = vpop.xlane.xlu1 %1183  ;;  %1264 = vadd.xlane.f32.xlu0 %v1263_v23 }
 0x2b7   : > { %2483 = vpow2.f32 %v1239_v59  ;;  %v1220_v29 = vsub.f32 %v3206_v33, %v1184_v19 }
 0x2b8   : > { %v3308_v20 = vpop.eup %2477 }
 0x2b9   : > { %v1241_v21 = vmul.f32 1.442695, %v1220_v29  ;;  %v1266_v36 = vsel %vm1166_vm3, %v3308_v20, 0.0 }
 0x2ba   : > { %1267 = vadd.xlane.f32.xlu1 %v1266_v36  ;;  %v1187_v22 = vpop.xlane.xlu0 %1186 }
 0x2bb   : > { %2485 = vpow2.f32 %v1241_v21  ;;  %v1221_v43 = vsub.f32 %v3215_v54, %v1187_v22 }
 0x2bc   : > { %v3313_v60 = vpop.eup %2479 }
 0x2bd   : > { %v1243_v24 = vmul.f32 1.442695, %v1221_v43  ;;  %v1269_v25 = vsel %vm1166_vm3, %v3313_v60, 0.0 }
 0x2be   : > { %v1190_v26 = vpop.xlane.xlu1 %1189  ;;  %1270 = vadd.xlane.f32.xlu0 %v1269_v25 }
 0x2bf   : > { %2487 = vpow2.f32 %v1243_v24  ;;  %v1222_v33 = vsub.f32 %v3224_v58, %v1190_v26 }
 0x2c0   : > { %v3318_v27 = vpop.eup %2481 }
 0x2c1   : > { %v1245_v63 = vmul.f32 1.442695, %v1222_v33  ;;  %v1272_v28 = vsel %vm1166_vm3, %v3318_v27, 0.0 }
 0x2c2   : > { %1273 = vadd.xlane.f32.xlu1 %v1272_v28  ;;  %v1193_v30 = vpop.xlane.xlu0 %1192 }
 0x2c3   : > { %2489 = vpow2.f32 %v1245_v63  ;;  %v1223_v54 = vsub.f32 %v3233_v40, %v1193_v30  ;;  %v2646_v30 = vmov 3  }
 0x2c4   : > { %v3323_v31 = vpop.eup %2483 }
 0x2c5   : > { %v1247_v32 = vmul.f32 1.442695, %v1223_v54  ;;  %v1275_v0 = vsel %vm1166_vm3, %v3323_v31, 0.0  ;;  %v2647_v54 = vmov 2  }
 0x2c6   : > { %v1196_v34 = vpop.xlane.xlu1 %1195  ;;  %1276 = vadd.xlane.f32.xlu0 %v1275_v0 }
 0x2c7   : > { %2491 = vpow2.f32 %v1247_v32  ;;  %v1224_v58 = vsub.f32 %v3242_v61, %v1196_v34  ;;  %v2645_v61 = vmov 0  }
 0x2c8   : > { %v3328_v35 = vpop.eup %2485  ;;  %2411 = vset.pattern.permute.xlu0 %v2645_v61 }
 0x2c9   : > { %v1249_v37 = vmul.f32 1.442695, %v1224_v58  ;;  %v1278_v38 = vsel %vm1166_vm3, %v3328_v35, 0.0 }
 0x2ca   : > { %1279 = vadd.xlane.f32.xlu1 %v1278_v38  ;;  %v1199_v3 = vpop.xlane.xlu0 %1198 }
 0x2cb   : > { %2493 = vpow2.f32 %v1249_v37  ;;  %v1225_v40 = vsub.f32 %v3251_v62, %v1199_v3 }
 0x2cc   : > { %v3333_v39 = vpop.eup %2487 }
 0x2cd   : > { %v1251_v41 = vmul.f32 1.442695, %v1225_v40  ;;  %v1281_v42 = vsel %vm1166_vm3, %v3333_v39, 0.0 }
 0x2ce   : > { %v1202_v4 = vpop.xlane.xlu1 %1201  ;;  %1282 = vadd.xlane.f32.xlu0 %v1281_v42 }
 0x2cf   : > { %2495 = vpow2.f32 %v1251_v41  ;;  %v1226_v45 = vsub.f32 %v3260_v1, %v1202_v4 }
 0x2d0   : > { %v3340_v46 = vpop.eup %2489 }
 0x2d1   : > { %v1253_v62 = vmul.f32 1.442695, %v1226_v45  ;;  %v1284_v47 = vsel %vm1166_vm3, %v3340_v46, 0.0 }
 0x2d2   : > { %1285 = vadd.xlane.f32.xlu1 %v1284_v47  ;;  %v1205_v48 = vpop.xlane.xlu0 %1204 }
 0x2d3   : > { %2497 = vpow2.f32 %v1253_v62  ;;  %v1227_v7 = vsub.f32 %v3269_v2, %v1205_v48 }
 0x2d4   : > { %v3345_v49 = vpop.eup %2491 }
 0x2d5   : > { %v1255_v50 = vmul.f32 1.442695, %v1227_v7  ;;  %v1287_v9 = vsel %vm1166_vm3, %v3345_v49, 0.0 }
 0x2d6   : > { %v1208_v52 = vpop.xlane.xlu1 %1207  ;;  %1288 = vadd.xlane.f32.xlu0 %v1287_v9 }
 0x2d7   : > { %2499 = vpow2.f32 %v1255_v50  ;;  %v1228_v1 = vsub.f32 %v3278_v5, %v1208_v52 }
 0x2d8   : > { %v3350_v8 = vpop.eup %2493 }
 0x2d9   : > { %v1257_v53 = vmul.f32 1.442695, %v1228_v1  ;;  %v1290_v55 = vsel %vm1166_vm3, %v3350_v8, 0.0 }
 0x2da   : > { %1291 = vadd.xlane.f32.xlu1 %v1290_v55  ;;  %v1211_v56 = vpop.xlane.xlu0 %1210 }
 0x2db   : > { %2501 = vpow2.f32 %v1257_v53  ;;  %v1229_v2 = vsub.f32 %v3287_v6, %v1211_v56 }
 0x2dc   : > { %v3355_v11 = vpop.eup %2495 }
 0x2dd   : > { %v1259_v12 = vmul.f32 1.442695, %v1229_v2  ;;  %v1293_v10 = vsel %vm1166_vm3, %v3355_v11, 0.0 }
 0x2de   : > { %v1214_v13 = vpop.xlane.xlu1 %1213  ;;  %1294 = vadd.xlane.f32.xlu0 %v1293_v10 }
 0x2df   : > { %2503 = vpow2.f32 %v1259_v12  ;;  %v1230_v5 = vsub.f32 %v3294_v51, %v1214_v13 }
 0x2e0   : > { %v3360_v57 = vpop.eup %2497 }
 0x2e1   : > { %v1261_v14 = vmul.f32 1.442695, %v1230_v5  ;;  %v1296_v15 = vsel %vm1166_vm3, %v3360_v57, 0.0  ;;  %v2168_v5 = vld [vmem:[%s2783_s9 + $0x100] sm:$0xff] }
 0x2e2   : > { %1297 = vadd.xlane.f32.xlu1 %v1296_v15  ;;  %v1344_v15 = vld [vmem:[%s2783_s9 + $0x8] sm:$0xff] }
 0x2e3   : > { %2505 = vpow2.f32 %v1261_v14  ;;  %v1343_v14 = vld [vmem:[%s2783_s9] sm:$0xff] }
 0x2e4   : > { %v3364_v6 = vpop.eup %2499 }
 0x2e5   : > { %v1299_v16 = vsel %vm1166_vm3, %v3364_v6, 0.0 }
 0x2e6   : > { %1300 = vadd.xlane.f32.xlu0 %v1299_v16 }
 0x2e8   : > { %v3368_v17 = vpop.eup %2501 }
 0x2e9   : > { %v1302_v51 = vsel %vm1166_vm3, %v3368_v17, 0.0 }
 0x2ea   : > { %1303 = vadd.xlane.f32.xlu1 %v1302_v51 }
 0x2ec   : > { %v3372_v59 = vpop.eup %2503 }
 0x2ed   : > { %v1305_v23 = vsel %vm1166_vm3, %v3372_v59, 0.0 }
 0x2ee   : > { %1306 = vadd.xlane.f32.xlu0 %v1305_v23 }
 0x2f0   : > { %v3376_v19 = vpop.eup %2505 }
 0x2f1   : > { %v1308_v29 = vsel %vm1166_vm3, %v3376_v19, 0.0 }
 0x2f2   : > { %1309 = vadd.xlane.f32.xlu1 %v1308_v29  ;;  %v2201_v29 = vld [vmem:[%s2783_s9 + $0x208] sm:$0xff] }
 0x33f   : > { %v1265_v21 = vpop.xlane.xlu0 %1264 }
 0x340   : > { %2507 = vrcp.f32 %v1265_v21  ;;  %v2232_v21 = vld [vmem:[%s2783_s9 + $0x300] sm:$0xff] }
 0x343   : > { %v1268_v36 = vpop.xlane.xlu1 %1267 }
 0x344   : > { %2509 = vrcp.f32 %v1268_v36  ;;  %v2233_v36 = vld [vmem:[%s2783_s9 + $0x308] sm:$0xff] }
 0x347   : > { %v1271_v22 = vpop.xlane.xlu0 %1270 }
 0x348   : > { %2511 = vrcp.f32 %v1271_v22 }
 0x34b   : > { %v1274_v43 = vpop.xlane.xlu1 %1273 }
 0x34c   : > { %2513 = vrcp.f32 %v1274_v43 }
 0x34d   : > { %v2508_v24 = vpop.eup %2507 }
 0x34e   : > { %v1312_v25 = vmul.f32 %v2508_v24, %v3303_v18 }
 0x34f   : > { %v1277_v26 = vpop.xlane.xlu0 %1276 }
 0x350   : > { %2515 = vrcp.f32 %v1277_v26  ;;  %1521 = vperm.xlu1 %2412, %v1312_v25   ;;  %2002 = vst.msk [vmem:[%s3384_s14] sm:$0xff] %vm1166_vm3, %v1312_v25  ;;  %1377 = vperm.xlu0 %2411, %v1312_v25  }
 0x351   : > { %v2510_v33 = vpop.eup %2509 }
 0x352   : > { %v1314_v63 = vmul.f32 %v2510_v33, %v3308_v20 }
 0x353   : > { %v1280_v28 = vpop.xlane.xlu1 %1279 }
 0x354   : > { %2517 = vrcp.f32 %v1280_v28  ;;  %2414 = vset.pattern.permute.xlu1 %v2646_v30  ;;  %2413 = vset.pattern.permute.xlu0 %v2647_v54  ;;  %2003 = vst.msk [vmem:[%s3384_s14 + $0x8] sm:$0xff] %vm1166_vm3, %v1314_v63 }
 0x355   : > { %v2512_v18 = vpop.eup %2511  ;;  %1843 = vperm.xlu1 %2414, %v1312_v25   ;;  %1682 = vperm.xlu0 %2413, %v1312_v25  }
 0x356   : > { %v1316_v32 = vmul.f32 %v2512_v18, %v3313_v60 }
 0x357   : > { %v1283_v0 = vpop.xlane.xlu0 %1282 }
 0x358   : > { %2519 = vrcp.f32 %v1283_v0  ;;  %2004 = vst.msk [vmem:[%s3384_s14 + $0x10] sm:$0xff] %vm1166_vm3, %v1316_v32  ;;  %v1345_v0 = vld [vmem:[%s2783_s9 + $0x10] sm:$0xff] }
 0x359   : > { %v2514_v20 = vpop.eup %2513  ;;  %2415 = vset.pattern.permute.xlu1 %v2645_v61  ;;  %2416 = vset.pattern.permute.xlu0 %v2644_v44 }
 0x35a   : > { %1382 = vperm.xlu1 %2415, %v1314_v63   ;;  %1525 = vperm.xlu0 %2416, %v1314_v63   ;;  %v3400_v34 = vmul.f32 %v2514_v20, %v3318_v27  ;;  %v1346_v20 = vld [vmem:[%s2783_s9 + $0x18] sm:$0xff] }
 0x35b   : > { %v1286_v58 = vpop.xlane.xlu1 %1285 }
 0x35c   : > { %2521 = vrcp.f32 %v1286_v58  ;;  %2005 = vst.msk [vmem:[%s3384_s14 + $0x18] sm:$0xff] %vm1166_vm3, %v3400_v34  ;;  %v2171_v58 = vld [vmem:[%s2783_s9 + $0x118] sm:$0xff] }
 0x35d   : > { %v2516_v60 = vpop.eup %2515 }
 0x35e   : > { %2417 = vset.pattern.permute.xlu1 %v2647_v54  ;;  %2418 = vset.pattern.permute.xlu0 %v2646_v30  ;;  %v3408_v37 = vmul.f32 %v2516_v60, %v3323_v31 }
 0x35f   : > { %1686 = vperm.xlu1 %2417, %v1314_v63   ;;  %1847 = vperm.xlu0 %2418, %v1314_v63   ;;  %v1289_v38 = vpop.xlane.xlu0 %1288 }
 0x360   : > { %2523 = vrcp.f32 %v1289_v38  ;;  %2006 = vst.msk [vmem:[%s3384_s14 + $0x20] sm:$0xff] %vm1166_vm3, %v3408_v37 }
 0x361   : > { %v2518_v27 = vpop.eup %2517 }
 0x362   : > { %v3414_v3 = vmul.f32 %v2518_v27, %v3328_v35 }
 0x363   : > { %v1292_v40 = vpop.xlane.xlu1 %1291  ;;  %2419 = vset.pattern.permute.xlu1 %v2645_v61  ;;  %2425 = vset.pattern.permute.xlu0 %v2647_v54 }
 0x364   : > { %2525 = vrcp.f32 %v1292_v40  ;;  %1694 = vperm.xlu0 %2425, %v3400_v34   ;;  %1387 = vperm.xlu1 %2419, %v1316_v32   ;;  %2007 = vst.msk [vmem:[%s3384_s14 + $0x28] sm:$0xff] %vm1166_vm3, %v3414_v3 }
 0x365   : > { %v2520_v31 = vpop.eup %2519 }
 0x366   : > { %v3423_v41 = vmul.f32 %v2520_v31, %v3333_v39 }
 0x367   : > { %v1295_v42 = vpop.xlane.xlu0 %1294 }
 0x368   : > { %2527 = vrcp.f32 %v1295_v42  ;;  %2428 = vset.pattern.permute.xlu0 %v2644_v44  ;;  %2420 = vset.pattern.permute.xlu1 %v2644_v44  ;;  %2008 = vst.msk [vmem:[%s3384_s14 + $0x30] sm:$0xff] %vm1166_vm3, %v3423_v41  ;;  %v2202_v42 = vld [vmem:[%s2783_s9 + $0x210] sm:$0xff] }
 0x369   : > { %v2522_v35 = vpop.eup %2521  ;;  %1529 = vperm.xlu1 %2420, %v1316_v32   ;;  %1537 = vperm.xlu0 %2428, %v3408_v37  }
 0x36a   : > { %v3432_v4 = vmul.f32 %v2522_v35, %v3340_v46  ;;  %v2203_v35 = vld [vmem:[%s2783_s9 + $0x218] sm:$0xff] }
 0x36b   : > { %v1298_v45 = vpop.xlane.xlu1 %1297 }
 0x36c   : > { %2529 = vrcp.f32 %v1298_v45  ;;  %2009 = vst.msk [vmem:[%s3384_s14 + $0x38] sm:$0xff] %vm1166_vm3, %v3432_v4  ;;  %v2234_v45 = vld [vmem:[%s2783_s9 + $0x310] sm:$0xff] }
 0x36d   : > { %v2524_v39 = vpop.eup %2523  ;;  %2421 = vset.pattern.permute.xlu1 %v2647_v54  ;;  %2430 = vset.pattern.permute.xlu0 %v2646_v30 }
 0x36e   : > { %1690 = vperm.xlu1 %2421, %v1316_v32   ;;  %1859 = vperm.xlu0 %2430, %v3408_v37   ;;  %v3441_v62 = vmul.f32 %v2524_v39, %v3345_v49  ;;  %v2235_v39 = vld [vmem:[%s2783_s9 + $0x318] sm:$0xff] }
 0x36f   : > { %v1301_v47 = vpop.xlane.xlu0 %1300 }
 0x370   : > { %2531 = vrcp.f32 %v1301_v47  ;;  %2010 = vst.msk [vmem:[%s3384_s14 + $0x40] sm:$0xff] %vm1166_vm3, %v3441_v62 }
 0x371   : > { %v2526_v46 = vpop.eup %2525 }
 0x372   : > { %2422 = vset.pattern.permute.xlu1 %v2646_v30  ;;  %2433 = vset.pattern.permute.xlu0 %v2647_v54  ;;  %v3449_v48 = vmul.f32 %v2526_v46, %v3350_v8 }
 0x373   : > { %v1304_v7 = vpop.xlane.xlu1 %1303  ;;  %1851 = vperm.xlu1 %2422, %v1316_v32   ;;  %1702 = vperm.xlu0 %2433, %v3414_v3  }
 0x374   : > { %2533 = vrcp.f32 %v1304_v7  ;;  %2011 = vst.msk [vmem:[%s3384_s14 + $0x48] sm:$0xff] %vm1166_vm3, %v3449_v48 }
 0x375   : > { %v2528_v49 = vpop.eup %2527 }
 0x376   : > { %v3456_v50 = vmul.f32 %v2528_v49, %v3355_v11 }
 0x377   : > { %2423 = vset.pattern.permute.xlu1 %v2645_v61  ;;  %2436 = vset.pattern.permute.xlu0 %v2644_v44  ;;  %v1307_v9 = vpop.xlane.xlu0 %1306 }
 0x378   : > { %2535 = vrcp.f32 %v1307_v9  ;;  %1392 = vperm.xlu1 %2423, %v3400_v34   ;;  %1545 = vperm.xlu0 %2436, %v3423_v41   ;;  %2012 = vst.msk [vmem:[%s3384_s14 + $0x50] sm:$0xff] %vm1166_vm3, %v3456_v50 }
 0x379   : > { %v2530_v52 = vpop.eup %2529 }
 0x37a   : > { %v3466_v1 = vmul.f32 %v2530_v52, %v3360_v57  ;;  %v2169_v57 = vld [vmem:[%s2783_s9 + $0x108] sm:$0xff] }
 0x37b   : > { %v1310_v8 = vpop.xlane.xlu1 %1309 }
 0x37c   : > { %2537 = vrcp.f32 %v1310_v8  ;;  %2424 = vset.pattern.permute.xlu1 %v2644_v44  ;;  %2438 = vset.pattern.permute.xlu0 %v2646_v30  ;;  %2013 = vst.msk [vmem:[%s3384_s14 + $0x58] sm:$0xff] %vm1166_vm3, %v3466_v1 }
 0x37d   : > { %v2532_v53 = vpop.eup %2531  ;;  %1533 = vperm.xlu1 %2424, %v3400_v34   ;;  %1867 = vperm.xlu0 %2438, %v3423_v41  }
 0x37e   : > { %v3476_v55 = vmul.f32 %v2532_v53, %v3364_v6 }
 0x380   : > { %2014 = vst.msk [vmem:[%s3384_s14 + $0x60] sm:$0xff] %vm1166_vm3, %v3476_v55 }
 0x381   : > { %v2534_v56 = vpop.eup %2533  ;;  %2426 = vset.pattern.permute.xlu1 %v2646_v30  ;;  %2441 = vset.pattern.permute.xlu0 %v2647_v54 }
 0x382   : > { %1855 = vperm.xlu1 %2426, %v3400_v34   ;;  %1710 = vperm.xlu0 %2441, %v3432_v4   ;;  %v3486_v2 = vmul.f32 %v2534_v56, %v3368_v17  ;;  %v2170_v34 = vld [vmem:[%s2783_s9 + $0x110] sm:$0xff] }
 0x384   : > { %2015 = vst.msk [vmem:[%s3384_s14 + $0x68] sm:$0xff] %vm1166_vm3, %v3486_v2 }
 0x385   : > { %v2536_v11 = vpop.eup %2535 }
 0x386   : > { %2427 = vset.pattern.permute.xlu1 %v2645_v61  ;;  %2444 = vset.pattern.permute.xlu0 %v2644_v44  ;;  %v3494_v12 = vmul.f32 %v2536_v11, %v3372_v59 }
 0x387   : > { %1397 = vperm.xlu1 %2427, %v3408_v37   ;;  %1553 = vperm.xlu0 %2444, %v3441_v62  }
 0x388   : > { %2016 = vst.msk [vmem:[%s3384_s14 + $0x70] sm:$0xff] %vm1166_vm3, %v3494_v12 }
 0x389   : > { %v2538_v10 = vpop.eup %2537 }
 0x38a   : > { %v3502_v13 = vmul.f32 %v2538_v10, %v3376_v19  ;;  %v2200_v19 = vld [vmem:[%s2783_s9 + $0x200] sm:$0xff]  ;;  %v2173_v10 = vld [vmem:[%s2783_s9 + $0x128] sm:$0xff] }
 0x38b   : > { %2429 = vset.pattern.permute.xlu1 %v2647_v54  ;;  %2446 = vset.pattern.permute.xlu0 %v2646_v30 }
 0x38c   : > { %1698 = vperm.xlu1 %2429, %v3408_v37   ;;  %1875 = vperm.xlu0 %2446, %v3441_v62   ;;  %2017 = vst.msk [vmem:[%s3384_s14 + $0x78] sm:$0xff] %vm1166_vm3, %v3502_v13 }
 0x390   : > { %2431 = vset.pattern.permute.xlu1 %v2645_v61  ;;  %2447 = vset.pattern.permute.xlu0 %v2645_v61 }
 0x391   : > { %1402 = vperm.xlu1 %2431, %v3414_v3   ;;  %1422 = vperm.xlu0 %2447, %v3449_v48  }
 0x395   : > { %2432 = vset.pattern.permute.xlu1 %v2644_v44  ;;  %2449 = vset.pattern.permute.xlu0 %v2647_v54 }
 0x396   : > { %1541 = vperm.xlu1 %2432, %v3414_v3   ;;  %1718 = vperm.xlu0 %2449, %v3449_v48  }
 0x39a   : > { %2434 = vset.pattern.permute.xlu1 %v2646_v30  ;;  %2452 = vset.pattern.permute.xlu0 %v2644_v44 }
 0x39b   : > { %1863 = vperm.xlu1 %2434, %v3414_v3   ;;  %1561 = vperm.xlu0 %2452, %v3456_v50  }
 0x39f   : > { %2435 = vset.pattern.permute.xlu1 %v2645_v61  ;;  %2454 = vset.pattern.permute.xlu0 %v2646_v30 }
 0x3a0   : > { %1407 = vperm.xlu1 %2435, %v3423_v41   ;;  %1883 = vperm.xlu0 %2454, %v3456_v50  }
 0x3a4   : > { %2437 = vset.pattern.permute.xlu1 %v2647_v54  ;;  %2455 = vset.pattern.permute.xlu0 %v2645_v61 }
 0x3a5   : > { %1706 = vperm.xlu1 %2437, %v3423_v41   ;;  %1432 = vperm.xlu0 %2455, %v3466_v1  }
 0x3a9   : > { %2439 = vset.pattern.permute.xlu1 %v2645_v61  ;;  %2457 = vset.pattern.permute.xlu0 %v2647_v54 }
 0x3aa   : > { %1412 = vperm.xlu1 %2439, %v3432_v4   ;;  %1726 = vperm.xlu0 %2457, %v3466_v1  }
 0x3ae   : > { %2440 = vset.pattern.permute.xlu1 %v2644_v44  ;;  %2460 = vset.pattern.permute.xlu0 %v2644_v44 }
 0x3af   : > { %1549 = vperm.xlu1 %2440, %v3432_v4   ;;  %1569 = vperm.xlu0 %2460, %v3476_v55  }
 0x3b3   : > { %2442 = vset.pattern.permute.xlu1 %v2646_v30  ;;  %2462 = vset.pattern.permute.xlu0 %v2646_v30 }
 0x3b4   : > { %1871 = vperm.xlu1 %2442, %v3432_v4   ;;  %1891 = vperm.xlu0 %2462, %v3476_v55  }
 0x3b8   : > { %2443 = vset.pattern.permute.xlu1 %v2645_v61  ;;  %2463 = vset.pattern.permute.xlu0 %v2645_v61 }
 0x3b9   : > { %1417 = vperm.xlu1 %2443, %v3441_v62   ;;  %1442 = vperm.xlu0 %2463, %v3486_v2  }
 0x3bd   : > { %2445 = vset.pattern.permute.xlu1 %v2647_v54  ;;  %2465 = vset.pattern.permute.xlu0 %v2647_v54 }
 0x3be   : > { %1714 = vperm.xlu1 %2445, %v3441_v62   ;;  %1734 = vperm.xlu0 %2465, %v3486_v2  }
 0x3c2   : > { %2448 = vset.pattern.permute.xlu1 %v2644_v44  ;;  %2468 = vset.pattern.permute.xlu0 %v2644_v44 }
 0x3c3   : > { %1557 = vperm.xlu1 %2448, %v3449_v48   ;;  %1577 = vperm.xlu0 %2468, %v3494_v12  }
 0x3c7   : > { %2450 = vset.pattern.permute.xlu1 %v2646_v30  ;;  %2470 = vset.pattern.permute.xlu0 %v2645_v61 }
 0x3c8   : > { %1879 = vperm.xlu1 %2450, %v3449_v48   ;;  %1452 = vperm.xlu0 %2470, %v3502_v13  }
 0x3cb   : > { %v1522_v6 = vpop.permute.xlu1 %1521  ;;  %v1378_v16 = vpop.permute.xlu0 %1377 }
 0x3cc   : > { %v1584_v17 = vmul.f32 %v2168_v5, %v1522_v6  ;;  %2451 = vset.pattern.permute.xlu1 %v2645_v61  ;;  %v1585_v51 = vmul.f32 %v2169_v57, %v1522_v6  ;;  %v1455_v59 = vmul.f32 %v1378_v16, %v1343_v14  ;;  %v1456_v23 = vmul.f32 %v1378_v16, %v1344_v15  ;;  %v1347_v5 = vld [vmem:[%s2783_s9 + $0x20] sm:$0xff]  ;;  %v1348_v57 = vld [vmem:[%s2783_s9 + $0x28] sm:$0xff] }
 0x3cd   : > { %2472 = vset.pattern.permute.xlu0 %v2647_v54  ;;  %1427 = vperm.xlu1 %2451, %v3456_v50   ;;  %v2204_v14 = vld [vmem:[%s2783_s9 + $0x220] sm:$0xff]  ;;  %v2205_v15 = vld [vmem:[%s2783_s9 + $0x228] sm:$0xff] }
 0x3ce   : > { %1742 = vperm.xlu0 %2472, %v3502_v13   ;;  %v1616_v24 = vadd.f32 %v1584_v17, %v1455_v59  ;;  %v1617_v25 = vadd.f32 %v1585_v51, %v1456_v23 }
 0x3d0   : > { %v1844_v22 = vpop.permute.xlu1 %1843  ;;  %v1683_v43 = vpop.permute.xlu0 %1682 }
 0x3d1   : > { %v1745_v26 = vmul.f32 %v2200_v19, %v1683_v43  ;;  %v1746_v33 = vmul.f32 %v2201_v29, %v1683_v43  ;;  %2453 = vset.pattern.permute.xlu1 %v2647_v54  ;;  %v1906_v63 = vmul.f32 %v2232_v21, %v1844_v22  ;;  %v1907_v28 = vmul.f32 %v2233_v36, %v1844_v22  ;;  %v2236_v29 = vld [vmem:[%s2783_s9 + $0x320] sm:$0xff]  ;;  %v2237_v21 = vld [vmem:[%s2783_s9 + $0x328] sm:$0xff] }
 0x3d2   : > { %2473 = vset.pattern.permute.xlu0 %v2646_v30  ;;  %1722 = vperm.xlu1 %2453, %v3456_v50  }
 0x3d3   : > { %v1777_v18 = vadd.f32 %v1745_v26, %v1616_v24  ;;  %v1778_v32 = vadd.f32 %v1746_v33, %v1617_v25  ;;  %1899 = vperm.xlu0 %2473, %v3494_v12  }
 0x3d5   : > { %v1938_v60 = vadd.f32 %v1906_v63, %v1777_v18  ;;  %v1939_v37 = vadd.f32 %v1907_v28, %v1778_v32  ;;  %v1383_v38 = vpop.permute.xlu1 %1382  ;;  %v1526_v27 = vpop.permute.xlu0 %1525  ;;  %v1349_v32 = vld [vmem:[%s2783_s9 + $0x30] sm:$0xff] }
 0x3d6   : > { %2456 = vset.pattern.permute.xlu1 %v2644_v44  ;;  %v1457_v3 = vmul.f32 %v1383_v38, %v1345_v0  ;;  %v1458_v40 = vmul.f32 %v1383_v38, %v1346_v20  ;;  %v1586_v31 = vmul.f32 %v2170_v34, %v1526_v27  ;;  %v1587_v41 = vmul.f32 %v2171_v58, %v1526_v27  ;;  %v1350_v0 = vld [vmem:[%s2783_s9 + $0x38] sm:$0xff]  ;;  %v2174_v20 = vld [vmem:[%s2783_s9 + $0x130] sm:$0xff] }
 0x3d7   : > { %1970 = vst [vmem:[%s3581_s16] sm:$0xff] %v1938_v60  ;;  %1971 = vst [vmem:[%s3581_s16 + $0x8] sm:$0xff] %v1939_v37  ;;  %1565 = vperm.xlu1 %2456, %v3466_v1   ;;  %v2175_v34 = vld [vmem:[%s2783_s9 + $0x138] sm:$0xff]  ;;  %v2206_v60 = vld [vmem:[%s2783_s9 + $0x230] sm:$0xff] }
 0x3d8   : > { %v1618_v47 = vadd.f32 %v1586_v31, %v1457_v3  ;;  %v1619_v46 = vadd.f32 %v1587_v41, %v1458_v40  ;;  %v2207_v37 = vld [vmem:[%s2783_s9 + $0x238] sm:$0xff] }
 0x3da   : > { %v1687_v4 = vpop.permute.xlu1 %1686  ;;  %v1848_v62 = vpop.permute.xlu0 %1847 }
 0x3db   : > { %v1747_v48 = vmul.f32 %v2202_v42, %v1687_v4  ;;  %v1748_v7 = vmul.f32 %v2203_v35, %v1687_v4  ;;  %2458 = vset.pattern.permute.xlu1 %v2646_v30  ;;  %v1908_v9 = vmul.f32 %v2234_v45, %v1848_v62  ;;  %v1909_v52 = vmul.f32 %v2235_v39, %v1848_v62  ;;  %v2238_v35 = vld [vmem:[%s2783_s9 + $0x330] sm:$0xff]  ;;  %v2239_v4 = vld [vmem:[%s2783_s9 + $0x338] sm:$0xff] }
 0x3dc   : > { %1887 = vperm.xlu1 %2458, %v3466_v1   ;;  %v2172_v1 = vld [vmem:[%s2783_s9 + $0x120] sm:$0xff] }
 0x3dd   : > { %v1779_v49 = vadd.f32 %v1747_v48, %v1618_v47  ;;  %v1780_v50 = vadd.f32 %v1748_v7, %v1619_v46  ;;  %v1351_v7 = vld [vmem:[%s2783_s9 + $0x40] sm:$0xff] }
 0x3df   : > { %v1940_v8 = vadd.f32 %v1908_v9, %v1779_v49  ;;  %v1941_v53 = vadd.f32 %v1909_v52, %v1780_v50  ;;  %v1388_v56 = vpop.permute.xlu1 %1387  ;;  %v1695_v33 = vpop.permute.xlu0 %1694  ;;  %v1352_v49 = vld [vmem:[%s2783_s9 + $0x48] sm:$0xff]  ;;  %v2176_v9 = vld [vmem:[%s2783_s9 + $0x140] sm:$0xff] }
 0x3e0   : > { %2459 = vset.pattern.permute.xlu1 %v2645_v61  ;;  %v1459_v51 = vmul.f32 %v1388_v56, %v1347_v5  ;;  %v1460_v59 = vmul.f32 %v1388_v56, %v1348_v57  ;;  %v1752_v31 = vmul.f32 %v2207_v37, %v1695_v33  ;;  %v2177_v52 = vld [vmem:[%s2783_s9 + $0x148] sm:$0xff]  ;;  %v2208_v56 = vld [vmem:[%s2783_s9 + $0x240] sm:$0xff]  ;;  %v2243_v37 = vld [vmem:[%s2783_s9 + $0x358] sm:$0xff] }
 0x3e1   : > { %1972 = vst [vmem:[%s3581_s16 + $0x10] sm:$0xff] %v1940_v8  ;;  %1973 = vst [vmem:[%s3581_s16 + $0x18] sm:$0xff] %v1941_v53  ;;  %1437 = vperm.xlu1 %2459, %v3476_v55   ;;  %v2240_v5 = vld [vmem:[%s2783_s9 + $0x340] sm:$0xff]  ;;  %v2241_v57 = vld [vmem:[%s2783_s9 + $0x348] sm:$0xff] }
 0x3e4   : > { %v1530_v11 = vpop.permute.xlu1 %1529  ;;  %v1538_v58 = vpop.permute.xlu0 %1537 }
 0x3e5   : > { %2461 = vset.pattern.permute.xlu1 %v2647_v54  ;;  %v1588_v6 = vmul.f32 %v2172_v1, %v1530_v11  ;;  %v1589_v16 = vmul.f32 %v2173_v10, %v1530_v11  ;;  %v2209_v11 = vld [vmem:[%s2783_s9 + $0x248] sm:$0xff]  ;;  %v1592_v1 = vmul.f32 %v2176_v9, %v1538_v58  ;;  %v1593_v10 = vmul.f32 %v2177_v52, %v1538_v58 }
 0x3e6   : > { %1730 = vperm.xlu1 %2461, %v3476_v55  }
 0x3e7   : > { %v1620_v55 = vadd.f32 %v1588_v6, %v1459_v51  ;;  %v1621_v36 = vadd.f32 %v1589_v16, %v1460_v59 }
 0x3e9   : > { %v1691_v17 = vpop.permute.xlu1 %1690  ;;  %v1860_v45 = vpop.permute.xlu0 %1859 }
 0x3ea   : > { %2464 = vset.pattern.permute.xlu1 %v2644_v44  ;;  %v1749_v23 = vmul.f32 %v2204_v14, %v1691_v17  ;;  %v1750_v19 = vmul.f32 %v2205_v15, %v1691_v17  ;;  %v1915_v51 = vmul.f32 %v2241_v57, %v1860_v45 }
 0x3eb   : > { %1573 = vperm.xlu1 %2464, %v3486_v2  }
 0x3ec   : > { %v1781_v43 = vadd.f32 %v1749_v23, %v1620_v55  ;;  %v1782_v24 = vadd.f32 %v1750_v19, %v1621_v36  ;;  %v1353_v55 = vld [vmem:[%s2783_s9 + $0x50] sm:$0xff] }
 0x3ee   : > { %v1852_v22 = vpop.permute.xlu1 %1851  ;;  %v1703_v8 = vpop.permute.xlu0 %1702 }
 0x3ef   : > { %v1910_v25 = vmul.f32 %v2236_v29, %v1852_v22  ;;  %v1911_v26 = vmul.f32 %v2237_v21, %v1852_v22  ;;  %2466 = vset.pattern.permute.xlu1 %v2646_v30  ;;  %v1354_v22 = vld [vmem:[%s2783_s9 + $0x58] sm:$0xff] }
 0x3f0   : > { %1895 = vperm.xlu1 %2466, %v3486_v2  }
 0x3f1   : > { %v1942_v63 = vadd.f32 %v1910_v25, %v1781_v43  ;;  %v1943_v28 = vadd.f32 %v1911_v26, %v1782_v24  ;;  %v2178_v43 = vld [vmem:[%s2783_s9 + $0x150] sm:$0xff]  ;;  %v2179_v24 = vld [vmem:[%s2783_s9 + $0x158] sm:$0xff] }
 0x3f2   : > { %v2210_v25 = vld [vmem:[%s2783_s9 + $0x250] sm:$0xff]  ;;  %v2211_v26 = vld [vmem:[%s2783_s9 + $0x258] sm:$0xff] }
 0x3f3   : > { %1974 = vst [vmem:[%s3581_s16 + $0x20] sm:$0xff] %v1942_v63  ;;  %1975 = vst [vmem:[%s3581_s16 + $0x28] sm:$0xff] %v1943_v28  ;;  %v1393_v18 = vpop.permute.xlu1 %1392  ;;  %v1546_v17 = vpop.permute.xlu0 %1545 }
 0x3f4   : > { %2467 = vset.pattern.permute.xlu1 %v2645_v61  ;;  %v1461_v38 = vmul.f32 %v1393_v18, %v1349_v32  ;;  %v1462_v27 = vmul.f32 %v1393_v18, %v1350_v0  ;;  %v1751_v61 = vmul.f32 %v2206_v60, %v1695_v33  ;;  %v1755_v0 = vmul.f32 %v2210_v25, %v1703_v8  ;;  %v2242_v60 = vld [vmem:[%s2783_s9 + $0x350] sm:$0xff] }
 0x3f5   : > { %1447 = vperm.xlu1 %2467, %v3494_v12  }
 0x3f8   : > { %v1534_v2 = vpop.permute.xlu1 %1533  ;;  %v1868_v36 = vpop.permute.xlu0 %1867 }
 0x3f9   : > { %v1590_v3 = vmul.f32 %v2174_v20, %v1534_v2  ;;  %v1591_v40 = vmul.f32 %v2175_v34, %v1534_v2  ;;  %2469 = vset.pattern.permute.xlu1 %v2647_v54  ;;  %v1756_v20 = vmul.f32 %v2211_v26, %v1703_v8  ;;  %v2246_v26 = vld [vmem:[%s2783_s9 + $0x370] sm:$0xff] }
 0x3fa   : > { %1738 = vperm.xlu1 %2469, %v3494_v12  }
 0x3fb   : > { %v1622_v41 = vadd.f32 %v1590_v3, %v1461_v38  ;;  %v1623_v42 = vadd.f32 %v1591_v40, %v1462_v27 }
 0x3fd   : > { %v1856_v39 = vpop.permute.xlu1 %1855  ;;  %v1783_v62 = vadd.f32 %v1751_v61, %v1622_v41  ;;  %v1784_v47 = vadd.f32 %v1752_v31, %v1623_v42  ;;  %v1711_v2 = vpop.permute.xlu0 %1710  ;;  %v1355_v42 = vld [vmem:[%s2783_s9 + $0x60] sm:$0xff] }
 0x3fe   : > { %v1912_v46 = vmul.f32 %v2238_v35, %v1856_v39  ;;  %v1913_v54 = vmul.f32 %v2239_v4, %v1856_v39  ;;  %2471 = vset.pattern.permute.xlu1 %v2644_v44  ;;  %v1356_v35 = vld [vmem:[%s2783_s9 + $0x68] sm:$0xff]  ;;  %v2180_v39 = vld [vmem:[%s2783_s9 + $0x160] sm:$0xff] }
 0x3ff   : > { %1581 = vperm.xlu1 %2471, %v3502_v13  }
 0x400   : > { %v1944_v12 = vadd.f32 %v1912_v46, %v1783_v62  ;;  %v1945_v48 = vadd.f32 %v1913_v54, %v1784_v47  ;;  %v2181_v62 = vld [vmem:[%s2783_s9 + $0x168] sm:$0xff]  ;;  %v2212_v54 = vld [vmem:[%s2783_s9 + $0x260] sm:$0xff] }
 0x402   : > { %1976 = vst [vmem:[%s3581_s16 + $0x30] sm:$0xff] %v1944_v12  ;;  %1977 = vst [vmem:[%s3581_s16 + $0x38] sm:$0xff] %v1945_v48  ;;  %v1398_v50 = vpop.permute.xlu1 %1397  ;;  %v3650_v4 = vpop.permute.xlu0 %1553  ;;  %v2213_v12 = vld [vmem:[%s2783_s9 + $0x268] sm:$0xff]  ;;  %v1596_v48 = vmul.f32 %v2180_v39, %v1546_v17 }
 0x403   : > { %2474 = vset.pattern.permute.xlu1 %v2646_v30  ;;  %v1463_v53 = vmul.f32 %v1398_v50, %v1351_v7  ;;  %v1464_v44 = vmul.f32 %v1398_v50, %v1352_v49  ;;  %v1597_v7 = vmul.f32 %v2181_v62, %v1546_v17  ;;  %v2244_v49 = vld [vmem:[%s2783_s9 + $0x360] sm:$0xff]  ;;  %v2245_v50 = vld [vmem:[%s2783_s9 + $0x368] sm:$0xff]  ;;  %v2182_v17 = vld [vmem:[%s2783_s9 + $0x170] sm:$0xff] }
 0x404   : > { %1903 = vperm.xlu1 %2474, %v3502_v13   ;;  %v1914_v13 = vmul.f32 %v2240_v5, %v1860_v45 }
 0x405   : > { %v1624_v15 = vadd.f32 %v1592_v1, %v1463_v53  ;;  %v1625_v6 = vadd.f32 %v1593_v10, %v1464_v44  ;;  %v1919_v1 = vmul.f32 %v2245_v50, %v1868_v36  ;;  %v1362_v50 = vld [vmem:[%s2783_s9 + $0x98] sm:$0xff] }
 0x407   : > { %v1699_v14 = vpop.permute.xlu1 %1698  ;;  %v3660_v52 = vpop.permute.xlu0 %1875 }
 0x408   : > { %v1753_v16 = vmul.f32 %v2208_v56, %v1699_v14  ;;  %v1754_v30 = vmul.f32 %v2209_v11, %v1699_v14  ;;  %v1918_v11 = vmul.f32 %v2244_v49, %v1868_v36 }
 0x40a   : > { %v1785_v59 = vadd.f32 %v1753_v16, %v1624_v15  ;;  %v1786_v23 = vadd.f32 %v1754_v30, %v1625_v6  ;;  %v1357_v16 = vld [vmem:[%s2783_s9 + $0x70] sm:$0xff]  ;;  %v1358_v30 = vld [vmem:[%s2783_s9 + $0x78] sm:$0xff] }
 0x40c   : > { %v1946_v19 = vadd.f32 %v1914_v13, %v1785_v59  ;;  %v1947_v29 = vadd.f32 %v1915_v51, %v1786_v23  ;;  %v1403_v21 = vpop.permute.xlu1 %1402  ;;  %v3662_v6 = vpop.permute.xlu0 %1422  ;;  %v2183_v13 = vld [vmem:[%s2783_s9 + $0x178] sm:$0xff]  ;;  %v2214_v51 = vld [vmem:[%s2783_s9 + $0x270] sm:$0xff] }
 0x40d   : > { %v1465_v63 = vmul.f32 %v1403_v21, %v1353_v55  ;;  %v1466_v28 = vmul.f32 %v1403_v21, %v1354_v22  ;;  %v2215_v59 = vld [vmem:[%s2783_s9 + $0x278] sm:$0xff]  ;;  %v1759_v36 = vmul.f32 %v2214_v51, %v1711_v2  ;;  %v2250_v51 = vld [vmem:[%s2783_s9 + $0x390] sm:$0xff] }
 0x40e   : > { %1978 = vst [vmem:[%s3581_s16 + $0x40] sm:$0xff] %v1946_v19  ;;  %1979 = vst [vmem:[%s3581_s16 + $0x48] sm:$0xff] %v1947_v29  ;;  %v1760_v22 = vmul.f32 %v2215_v59, %v1711_v2  ;;  %v2251_v59 = vld [vmem:[%s2783_s9 + $0x398] sm:$0xff] }
 0x411   : > { %v1542_v33 = vpop.permute.xlu1 %1541 }
 0x412   : > { %v1594_v18 = vmul.f32 %v2178_v43, %v1542_v33  ;;  %v1595_v32 = vmul.f32 %v2179_v24, %v1542_v33  ;;  %v1719_v43 = vpop.permute.xlu0 %1718  ;;  %v2247_v33 = vld [vmem:[%s2783_s9 + $0x378] sm:$0xff] }
 0x414   : > { %v1626_v34 = vadd.f32 %v1594_v18, %v1465_v63  ;;  %v1627_v58 = vadd.f32 %v1595_v32, %v1466_v28 }
 0x416   : > { %v1864_v38 = vpop.permute.xlu1 %1863  ;;  %v1787_v27 = vadd.f32 %v1755_v0, %v1626_v34  ;;  %v1788_v3 = vadd.f32 %v1756_v20, %v1627_v58  ;;  %v3674_v58 = vpop.permute.xlu0 %1561 }
 0x417   : > { %v1916_v40 = vmul.f32 %v2242_v60, %v1864_v38  ;;  %v1917_v61 = vmul.f32 %v2243_v37, %v1864_v38  ;;  %v1359_v60 = vld [vmem:[%s2783_s9 + $0x80] sm:$0xff]  ;;  %v1360_v37 = vld [vmem:[%s2783_s9 + $0x88] sm:$0xff] }
 0x418   : > { %v2184_v38 = vld [vmem:[%s2783_s9 + $0x180] sm:$0xff] }
 0x419   : > { %v1948_v31 = vadd.f32 %v1916_v40, %v1787_v27  ;;  %v1949_v41 = vadd.f32 %v1917_v61, %v1788_v3  ;;  %v2185_v27 = vld [vmem:[%s2783_s9 + $0x188] sm:$0xff]  ;;  %v2216_v61 = vld [vmem:[%s2783_s9 + $0x280] sm:$0xff] }
 0x41b   : > { %1980 = vst [vmem:[%s3581_s16 + $0x50] sm:$0xff] %v1948_v31  ;;  %1981 = vst [vmem:[%s3581_s16 + $0x58] sm:$0xff] %v1949_v41  ;;  %v1408_v45 = vpop.permute.xlu1 %1407  ;;  %v2217_v31 = vld [vmem:[%s2783_s9 + $0x288] sm:$0xff]  ;;  %v1600_v41 = vmul.f32 %v2184_v38, %v3650_v4  ;;  %v3688_v39 = vpop.permute.xlu0 %1883 }
 0x41c   : > { %v1467_v47 = vmul.f32 %v1408_v45, %v1355_v42  ;;  %v1468_v46 = vmul.f32 %v1408_v45, %v1356_v35  ;;  %v1601_v42 = vmul.f32 %v2185_v27, %v3650_v4  ;;  %v2248_v35 = vld [vmem:[%s2783_s9 + $0x380] sm:$0xff]  ;;  %v2249_v45 = vld [vmem:[%s2783_s9 + $0x388] sm:$0xff] }
 0x41d   : > { %v1923_v49 = vmul.f32 %v2249_v45, %v3660_v52 }
 0x41e   : > { %v1628_v8 = vadd.f32 %v1596_v48, %v1467_v47  ;;  %v1629_v53 = vadd.f32 %v1597_v7, %v1468_v46  ;;  %v1361_v48 = vld [vmem:[%s2783_s9 + $0x90] sm:$0xff]  ;;  %v1922_v7 = vmul.f32 %v2248_v35, %v3660_v52 }
 0x420   : > { %v1707_v9 = vpop.permute.xlu1 %1706 }
 0x421   : > { %v1757_v44 = vmul.f32 %v2212_v54, %v1707_v9  ;;  %v1758_v56 = vmul.f32 %v2213_v12, %v1707_v9 }
 0x423   : > { %v1789_v10 = vadd.f32 %v1757_v44, %v1628_v8  ;;  %v1790_v5 = vadd.f32 %v1758_v56, %v1629_v53  ;;  %v2186_v8 = vld [vmem:[%s2783_s9 + $0x190] sm:$0xff]  ;;  %v2187_v53 = vld [vmem:[%s2783_s9 + $0x198] sm:$0xff] }
 0x424   : > { %v2218_v44 = vld [vmem:[%s2783_s9 + $0x290] sm:$0xff]  ;;  %v2219_v56 = vld [vmem:[%s2783_s9 + $0x298] sm:$0xff] }
 0x425   : > { %v1950_v57 = vadd.f32 %v1918_v11, %v1789_v10  ;;  %v1951_v14 = vadd.f32 %v1919_v1, %v1790_v5  ;;  %v1413_v15 = vpop.permute.xlu1 %1412  ;;  %v1473_v5 = vmul.f32 %v3662_v6, %v1361_v48 }
 0x426   : > { %v1469_v19 = vmul.f32 %v1413_v15, %v1357_v16  ;;  %v1470_v29 = vmul.f32 %v1413_v15, %v1358_v30  ;;  %v1763_v16 = vmul.f32 %v2218_v44, %v1719_v43  ;;  %v1764_v30 = vmul.f32 %v2219_v56, %v1719_v43  ;;  %v1363_v43 = vld [vmem:[%s2783_s9 + $0xa0] sm:$0xff]  ;;  %v2254_v56 = vld [vmem:[%s2783_s9 + $0x3b0] sm:$0xff] }
 0x427   : > { %1982 = vst [vmem:[%s3581_s16 + $0x60] sm:$0xff] %v1950_v57  ;;  %1983 = vst [vmem:[%s3581_s16 + $0x68] sm:$0xff] %v1951_v14  ;;  %v1474_v57 = vmul.f32 %v3662_v6, %v1362_v50  ;;  %v1433_v14 = vpop.permute.xlu0 %1432 }
 0x42a   : > { %v1550_v23 = vpop.permute.xlu1 %1549 }
 0x42b   : > { %v1598_v21 = vmul.f32 %v2182_v17, %v1550_v23  ;;  %v1599_v55 = vmul.f32 %v2183_v13, %v1550_v23 }
 0x42d   : > { %v1630_v24 = vadd.f32 %v1598_v21, %v1469_v19  ;;  %v1631_v25 = vadd.f32 %v1599_v55, %v1470_v29  ;;  %v1727_v55 = vpop.permute.xlu0 %1726 }
 0x42f   : > { %v1872_v63 = vpop.permute.xlu1 %1871  ;;  %v1791_v28 = vadd.f32 %v1759_v36, %v1630_v24  ;;  %v1792_v18 = vadd.f32 %v1760_v22, %v1631_v25  ;;  %v1364_v24 = vld [vmem:[%s2783_s9 + $0xa8] sm:$0xff] }
 0x430   : > { %v1920_v32 = vmul.f32 %v2246_v26, %v1872_v63  ;;  %v1921_v0 = vmul.f32 %v2247_v33, %v1872_v63  ;;  %v2188_v26 = vld [vmem:[%s2783_s9 + $0x1a0] sm:$0xff]  ;;  %v2189_v33 = vld [vmem:[%s2783_s9 + $0x1a8] sm:$0xff] }
 0x432   : > { %v1952_v20 = vadd.f32 %v1920_v32, %v1791_v28  ;;  %v1953_v34 = vadd.f32 %v1921_v0, %v1792_v18  ;;  %v1570_v18 = vpop.permute.xlu0 %1569  ;;  %v2220_v32 = vld [vmem:[%s2783_s9 + $0x2a0] sm:$0xff]  ;;  %v2221_v0 = vld [vmem:[%s2783_s9 + $0x2a8] sm:$0xff] }
 0x434   : > { %1984 = vst [vmem:[%s3581_s16 + $0x70] sm:$0xff] %v1952_v20  ;;  %1985 = vst [vmem:[%s3581_s16 + $0x78] sm:$0xff] %v1953_v34  ;;  %v1418_v2 = vpop.permute.xlu1 %1417  ;;  %v1604_v20 = vmul.f32 %v2188_v26, %v3674_v58  ;;  %v1605_v34 = vmul.f32 %v2189_v33, %v3674_v58  ;;  %v2190_v58 = vld [vmem:[%s2783_s9 + $0x1b0] sm:$0xff] }
 0x435   : > { %v1471_v3 = vmul.f32 %v1418_v2, %v1359_v60  ;;  %v1472_v40 = vmul.f32 %v1418_v2, %v1360_v37  ;;  %v2252_v60 = vld [vmem:[%s2783_s9 + $0x3a0] sm:$0xff]  ;;  %v2253_v37 = vld [vmem:[%s2783_s9 + $0x3a8] sm:$0xff] }
 0x437   : > { %v1632_v47 = vadd.f32 %v1600_v41, %v1471_v3  ;;  %v1633_v46 = vadd.f32 %v1601_v42, %v1472_v40  ;;  %v1927_v41 = vmul.f32 %v2253_v37, %v3688_v39  ;;  %v1366_v42 = vld [vmem:[%s2783_s9 + $0xb8] sm:$0xff] }
 0x438   : > { %v1478_v50 = vmul.f32 %v1433_v14, %v1366_v42 }
 0x439   : > { %v1715_v62 = vpop.permute.xlu1 %1714 }
 0x43a   : > { %v1761_v54 = vmul.f32 %v2216_v61, %v1715_v62  ;;  %v1762_v12 = vmul.f32 %v2217_v31, %v1715_v62  ;;  %v1365_v61 = vld [vmem:[%s2783_s9 + $0xb0] sm:$0xff]  ;;  %v1926_v31 = vmul.f32 %v2252_v60, %v3688_v39  ;;  %v2191_v62 = vld [vmem:[%s2783_s9 + $0x1b8] sm:$0xff] }
 0x43c   : > { %v1793_v4 = vadd.f32 %v1761_v54, %v1632_v47  ;;  %v1794_v9 = vadd.f32 %v1762_v12, %v1633_v46  ;;  %v1892_v47 = vpop.permute.xlu0 %1891  ;;  %v2222_v46 = vld [vmem:[%s2783_s9 + $0x2b0] sm:$0xff]  ;;  %v2223_v54 = vld [vmem:[%s2783_s9 + $0x2b8] sm:$0xff] }
 0x43d   : > { %v1767_v39 = vmul.f32 %v2222_v46, %v1727_v55 }
 0x43e   : > { %v1954_v11 = vadd.f32 %v1922_v7, %v1793_v4  ;;  %v1955_v1 = vadd.f32 %v1923_v49, %v1794_v9  ;;  %v1558_v10 = vpop.permute.xlu1 %1557  ;;  %v1477_v49 = vmul.f32 %v1433_v14, %v1365_v61 }
 0x43f   : > { %v1602_v52 = vmul.f32 %v2186_v8, %v1558_v10  ;;  %v1603_v15 = vmul.f32 %v2187_v53, %v1558_v10  ;;  %v1768_v8 = vmul.f32 %v2223_v54, %v1727_v55  ;;  %v2258_v54 = vld [vmem:[%s2783_s9 + $0x3d0] sm:$0xff] }
 0x440   : > { %1986 = vst [vmem:[%s3581_s16 + $0x80] sm:$0xff] %v1954_v11  ;;  %1987 = vst [vmem:[%s3581_s16 + $0x88] sm:$0xff] %v1955_v1  ;;  %v2255_v11 = vld [vmem:[%s2783_s9 + $0x3b8] sm:$0xff]  ;;  %v1443_v1 = vpop.permute.xlu0 %1442 }
 0x441   : > { %v1634_v17 = vadd.f32 %v1602_v52, %v1473_v5  ;;  %v1635_v13 = vadd.f32 %v1603_v15, %v1474_v57 }
 0x443   : > { %v1880_v23 = vpop.permute.xlu1 %1879  ;;  %v1795_v19 = vadd.f32 %v1763_v16, %v1634_v17  ;;  %v1796_v6 = vadd.f32 %v1764_v30, %v1635_v13  ;;  %v1367_v30 = vld [vmem:[%s2783_s9 + $0xc0] sm:$0xff]  ;;  %v1368_v17 = vld [vmem:[%s2783_s9 + $0xc8] sm:$0xff] }
 0x444   : > { %v1924_v29 = vmul.f32 %v2250_v51, %v1880_v23  ;;  %v1925_v21 = vmul.f32 %v2251_v59, %v1880_v23  ;;  %v2192_v51 = vld [vmem:[%s2783_s9 + $0x1c0] sm:$0xff]  ;;  %v2193_v59 = vld [vmem:[%s2783_s9 + $0x1c8] sm:$0xff]  ;;  %v1735_v23 = vpop.permute.xlu0 %1734 }
 0x445   : > { %v1608_v55 = vmul.f32 %v2192_v51, %v1570_v18 }
 0x446   : > { %v1956_v36 = vadd.f32 %v1924_v29, %v1795_v19  ;;  %v1957_v22 = vadd.f32 %v1925_v21, %v1796_v6  ;;  %v2224_v29 = vld [vmem:[%s2783_s9 + $0x2c0] sm:$0xff]  ;;  %v2225_v21 = vld [vmem:[%s2783_s9 + $0x2c8] sm:$0xff] }
 0x448   : > { %1988 = vst [vmem:[%s3581_s16 + $0x90] sm:$0xff] %v1956_v36  ;;  %1989 = vst [vmem:[%s3581_s16 + $0x98] sm:$0xff] %v1957_v22  ;;  %v1428_v25 = vpop.permute.xlu1 %1427  ;;  %v1609_v36 = vmul.f32 %v2193_v59, %v1570_v18  ;;  %v2256_v22 = vld [vmem:[%s2783_s9 + $0x3c0] sm:$0xff]  ;;  %v2194_v18 = vld [vmem:[%s2783_s9 + $0x1d0] sm:$0xff] }
 0x449   : > { %v1475_v63 = vmul.f32 %v1428_v25, %v1363_v43  ;;  %v1476_v28 = vmul.f32 %v1428_v25, %v1364_v24  ;;  %v2257_v43 = vld [vmem:[%s2783_s9 + $0x3c8] sm:$0xff] }
 0x44b   : > { %v1636_v38 = vadd.f32 %v1604_v20, %v1475_v63  ;;  %v1637_v27 = vadd.f32 %v1605_v34, %v1476_v28  ;;  %v1369_v28 = vld [vmem:[%s2783_s9 + $0xd0] sm:$0xff]  ;;  %v1931_v20 = vmul.f32 %v2257_v43, %v1892_v47  ;;  %v1370_v34 = vld [vmem:[%s2783_s9 + $0xd8] sm:$0xff] }
 0x44c   : > { %v2198_v43 = vld [vmem:[%s2783_s9 + $0x1f0] sm:$0xff] }
 0x44d   : > { %v1723_v2 = vpop.permute.xlu1 %1722 }
 0x44e   : > { %v1765_v3 = vmul.f32 %v2220_v32, %v1723_v2  ;;  %v1766_v40 = vmul.f32 %v2221_v0, %v1723_v2  ;;  %v1578_v32 = vpop.permute.xlu0 %1577  ;;  %v1930_v0 = vmul.f32 %v2256_v22, %v1892_v47  ;;  %v2195_v2 = vld [vmem:[%s2783_s9 + $0x1d8] sm:$0xff] }
 0x450   : > { %v1797_v35 = vadd.f32 %v1765_v3, %v1636_v38  ;;  %v1798_v45 = vadd.f32 %v1766_v40, %v1637_v27  ;;  %v2226_v38 = vld [vmem:[%s2783_s9 + $0x2d0] sm:$0xff]  ;;  %v2227_v27 = vld [vmem:[%s2783_s9 + $0x2d8] sm:$0xff] }
 0x452   : > { %v1958_v12 = vadd.f32 %v1926_v31, %v1797_v35  ;;  %v1959_v48 = vadd.f32 %v1927_v41, %v1798_v45  ;;  %v1566_v7 = vpop.permute.xlu1 %1565  ;;  %v1481_v31 = vmul.f32 %v1443_v1, %v1369_v28  ;;  %v1482_v41 = vmul.f32 %v1443_v1, %v1370_v34  ;;  %v2197_v1 = vld [vmem:[%s2783_s9 + $0x1e8] sm:$0xff] }
 0x453   : > { %v1606_v4 = vmul.f32 %v2190_v58, %v1566_v7  ;;  %v1607_v9 = vmul.f32 %v2191_v62, %v1566_v7  ;;  %v1771_v45 = vmul.f32 %v2226_v38, %v1735_v23  ;;  %v1772_v58 = vmul.f32 %v2227_v27, %v1735_v23  ;;  %v1453_v62 = vpop.permute.xlu0 %1452  ;;  %v2262_v38 = vld [vmem:[%s2783_s9 + $0x3f0] sm:$0xff]  ;;  %v2263_v27 = vld [vmem:[%s2783_s9 + $0x3f8] sm:$0xff] }
 0x454   : > { %1990 = vst [vmem:[%s3581_s16 + $0xa0] sm:$0xff] %v1958_v12  ;;  %1991 = vst [vmem:[%s3581_s16 + $0xa8] sm:$0xff] %v1959_v48  ;;  %v2259_v12 = vld [vmem:[%s2783_s9 + $0x3d8] sm:$0xff] }
 0x455   : > { %v1638_v53 = vadd.f32 %v1606_v4, %v1477_v49  ;;  %v1639_v44 = vadd.f32 %v1607_v9, %v1478_v50 }
 0x457   : > { %v1888_v10 = vpop.permute.xlu1 %1887  ;;  %v1799_v5 = vadd.f32 %v1767_v39, %v1638_v53  ;;  %v1800_v57 = vadd.f32 %v1768_v8, %v1639_v44  ;;  %v1743_v8 = vpop.permute.xlu0 %1742  ;;  %v1371_v53 = vld [vmem:[%s2783_s9 + $0xe0] sm:$0xff]  ;;  %v1372_v44 = vld [vmem:[%s2783_s9 + $0xe8] sm:$0xff] }
 0x458   : > { %v1928_v14 = vmul.f32 %v2254_v56, %v1888_v10  ;;  %v1929_v52 = vmul.f32 %v2255_v11, %v1888_v10  ;;  %v2196_v11 = vld [vmem:[%s2783_s9 + $0x1e0] sm:$0xff] }
 0x45a   : > { %v1960_v15 = vadd.f32 %v1928_v14, %v1799_v5  ;;  %v1961_v16 = vadd.f32 %v1929_v52, %v1800_v57  ;;  %v2228_v57 = vld [vmem:[%s2783_s9 + $0x2e0] sm:$0xff]  ;;  %v2229_v14 = vld [vmem:[%s2783_s9 + $0x2e8] sm:$0xff]  ;;  %v1612_v52 = vmul.f32 %v2196_v11, %v1578_v32 }
 0x45c   : > { %1992 = vst [vmem:[%s3581_s16 + $0xb0] sm:$0xff] %v1960_v15  ;;  %1993 = vst [vmem:[%s3581_s16 + $0xb8] sm:$0xff] %v1961_v16  ;;  %v1438_v13 = vpop.permute.xlu1 %1437  ;;  %v1613_v15 = vmul.f32 %v2197_v1, %v1578_v32  ;;  %v2260_v16 = vld [vmem:[%s2783_s9 + $0x3e0] sm:$0xff] }
 0x45d   : > { %v1479_v19 = vmul.f32 %v1438_v13, %v1367_v30  ;;  %v1480_v6 = vmul.f32 %v1438_v13, %v1368_v17  ;;  %v2261_v30 = vld [vmem:[%s2783_s9 + $0x3e8] sm:$0xff]  ;;  %v1900_v17 = vpop.permute.xlu0 %1899 }
 0x45f   : > { %v1640_v25 = vadd.f32 %v1608_v55, %v1479_v19  ;;  %v1641_v26 = vadd.f32 %v1609_v36, %v1480_v6  ;;  %v1373_v6 = vld [vmem:[%s2783_s9 + $0xf0] sm:$0xff]  ;;  %v1935_v55 = vmul.f32 %v2261_v30, %v1900_v17 }
 0x460   : > { %v1485_v32 = vmul.f32 %v1453_v62, %v1373_v6 }
 0x461   : > { %v1731_v24 = vpop.permute.xlu1 %1730 }
 0x462   : > { %v1769_v33 = vmul.f32 %v2224_v29, %v1731_v24  ;;  %v1770_v63 = vmul.f32 %v2225_v21, %v1731_v24  ;;  %v1374_v29 = vld [vmem:[%s2783_s9 + $0xf8] sm:$0xff]  ;;  %v1934_v21 = vmul.f32 %v2260_v16, %v1900_v17 }
 0x463   : > { %v2199_v24 = vld [vmem:[%s2783_s9 + $0x1f8] sm:$0xff] }
 0x464   : > { %v1801_v60 = vadd.f32 %v1769_v33, %v1640_v25  ;;  %v1802_v37 = vadd.f32 %v1770_v63, %v1641_v26  ;;  %v2230_v25 = vld [vmem:[%s2783_s9 + $0x2f0] sm:$0xff]  ;;  %v2231_v26 = vld [vmem:[%s2783_s9 + $0x2f8] sm:$0xff]  ;;  %s2565_s9 = scalar_lea.vmem %s3775_s25, 4096 }
 0x465   : > { %p2566_p5 = scmp.ne.s32.totalorder %s3775_s25, %s2565_s9  ;;  %p2573_p2 = scmp.lt.s32.totalorder %s2571_s15, %s2565_s9 }
 0x466   : > { %v1962_v3 = vadd.f32 %v1930_v0, %v1801_v60  ;;  %v1963_v40 = vadd.f32 %v1931_v20, %v1802_v37  ;;  %v1574_v61 = vpop.permute.xlu1 %1573  ;;  %v1486_v0 = vmul.f32 %v1453_v62, %v1374_v29  ;;  %v1775_v60 = vmul.f32 %v2230_v25, %v1743_v8 }
 0x467   : > { %v1610_v42 = vmul.f32 %v2194_v18, %v1574_v61  ;;  %v1611_v35 = vmul.f32 %v2195_v2, %v1574_v61  ;;  %v1776_v37 = vmul.f32 %v2231_v26, %v1743_v8  ;;  %p2567_p12 = pnand %p2566_p5, %p3836_p11  ;;  %p2574_p0 = por %p2573_p2, %p2572_p1 }
 0x468   : > { %1994 = vst [vmem:[%s3581_s16 + $0xc0] sm:$0xff] %v1962_v3  ;;  %1995 = vst [vmem:[%s3581_s16 + $0xc8] sm:$0xff] %v1963_v40 }
 0x469   : > { %v1642_v47 = vadd.f32 %v1610_v42, %v1481_v31  ;;  %v1643_v46 = vadd.f32 %v1611_v35, %v1482_v41  ;;  %p2568_p13 = pneg %p2567_p12 }
 0x46b   : > { %v1896_v48 = vpop.permute.xlu1 %1895  ;;  %v1803_v7 = vadd.f32 %v1771_v45, %v1642_v47  ;;  %v1804_v49 = vadd.f32 %v1772_v58, %v1643_v46  ;;  %p2575_p7 = pnand %p2574_p0, %p2568_p13 }
 0x46c   : > { %v1932_v50 = vmul.f32 %v2258_v54, %v1896_v48  ;;  %v1933_v4 = vmul.f32 %v2259_v12, %v1896_v48 }
 0x46e   : > { %v1964_v9 = vadd.f32 %v1932_v50, %v1803_v7  ;;  %v1965_v39 = vadd.f32 %v1933_v4, %v1804_v49 }
 0x470   : > { %1996 = vst [vmem:[%s3581_s16 + $0xd0] sm:$0xff] %v1964_v9  ;;  %1997 = vst [vmem:[%s3581_s16 + $0xd8] sm:$0xff] %v1965_v39  ;;  %v1448_v56 = vpop.permute.xlu1 %1447 }
 0x471   : > { %v1483_v10 = vmul.f32 %v1448_v56, %v1371_v53  ;;  %v1484_v5 = vmul.f32 %v1448_v56, %v1372_v44 }
 0x473   : > { %v1644_v51 = vadd.f32 %v1612_v52, %v1483_v10  ;;  %v1645_v59 = vadd.f32 %v1613_v15, %v1484_v5 }
 0x475   : > { %v1739_v13 = vpop.permute.xlu1 %1738 }
 0x476   : > { %v1773_v23 = vmul.f32 %v2228_v57, %v1739_v13  ;;  %v1774_v19 = vmul.f32 %v2229_v14, %v1739_v13 }
 0x478   : > { %v1805_v36 = vadd.f32 %v1773_v23, %v1644_v51  ;;  %v1806_v22 = vadd.f32 %v1774_v19, %v1645_v59 }
 0x47a   : > { %v1966_v33 = vadd.f32 %v1934_v21, %v1805_v36  ;;  %v1967_v63 = vadd.f32 %v1935_v55, %v1806_v22  ;;  %v1582_v28 = vpop.permute.xlu1 %1581 }
 0x47b   : > { %v1614_v20 = vmul.f32 %v2198_v43, %v1582_v28  ;;  %v1615_v34 = vmul.f32 %v2199_v24, %v1582_v28 }
 0x47c   : > { %1998 = vst [vmem:[%s3581_s16 + $0xe0] sm:$0xff] %v1966_v33  ;;  %1999 = vst [vmem:[%s3581_s16 + $0xe8] sm:$0xff] %v1967_v63 }
 0x47d   : > { %v1646_v18 = vadd.f32 %v1614_v20, %v1485_v32  ;;  %v1647_v2 = vadd.f32 %v1615_v34, %v1486_v0 }
 0x47f   : > { %v1904_v3 = vpop.permute.xlu1 %1903  ;;  %v1807_v40 = vadd.f32 %v1775_v60, %v1646_v18  ;;  %v1808_v61 = vadd.f32 %v1776_v37, %v1647_v2 }
 0x480   : > { %v1936_v31 = vmul.f32 %v2262_v38, %v1904_v3  ;;  %v1937_v41 = vmul.f32 %v2263_v27, %v1904_v3 }
 0x482   : > { %v1968_v42 = vadd.f32 %v1936_v31, %v1807_v40  ;;  %v1969_v35 = vadd.f32 %v1937_v41, %v1808_v61 }
 0x484   : > { %2000 = vst [vmem:[%s3581_s16 + $0xf0] sm:$0xff] %v1968_v42  ;;  %2001 = vst [vmem:[%s3581_s16 + $0xf8] sm:$0xff] %v1969_v35 }
 0x485   : > { %2578 = shalt.err (!%p2575_p7)
}
 0x486   : > { %s2579_s8 = scalar_lea.hbm %s3773_s28, 4096  ;;  %s2583_s13 = scalar_lea.hbm %s3824_s4, 8192 }
 0x487   : > { %p2580_p3 = scmp.ne.s32.totalorder %s3773_s28, %s2579_s8  ;;  %p2584_p6 = scmp.lt.s32.totalorder %s3773_s28, %s3824_s4 }
 0x488   : > { %p2585_p4 = scmp.lt.s32.totalorder %s2583_s13, %s2579_s8 }
 0x489   : > { %p2581_p8 = pnand %p2580_p3, %p3836_p11 }
 0x48a   : > { %p2586_p5 = por %p2585_p4, %p2584_p6 }
 0x48b   : > { %p2582_p9 = pneg %p2581_p8 }
 0x48d   : > { %p2587_p12 = pnand %p2586_p5, %p2582_p9 }
 0x48f   : > { %2590 = shalt.err (!%p2587_p12)
}
 0x490   : > { %s2649_s16 = smov 256   ;;  %s2650_s23 = smov 16  }
 0x491   : > { %2351 = dma.vmem_to_hbm [thread:$0]  (%p3836_p11), %s3775_s25, 4096, %s3773_s28, %s2019_s22, %s2649_s16, %s2649_s16, %s2650_s23  }
 0x492 PF: > { %s2057_s10 = sand.u32 1, %s2621_s18   ;;  %p3837_p13 = scmp.ne.s32.totalorder %s3832_s6, 0 }
 0x493   : > { %s2058_s1 = scalar_lea.sflag [#allocation4], %s2057_s10 }
 0x494   : > { %p2358_p1 = pnand %p2153_p10, %p3837_p13 }
 0x496   : > { %p2359_p2 = pneg %p2358_p1 }
 0x498   : > { %2616 = dma.done.wait (%p2359_p2), %s2058_s1, 4096  }
 0x499   : > { %2618 = vsyncadd (%p2359_p2), %s2058_s1, 4294963200  ;;  %p20_p0 = scmp.ge.s32.totalorder %s2706_s24, 4   ;;  %s3838_s18 = smov %s2625_s19 }
 0x49a   : > { %s3839_s19 = smov %s2629_s20  ;;  %s3840_s20 = smov %s2718_s27 }
 0x49b   : > { %s3841_s21 = smov %s2706_s24  ;;  %22 = sbr.rel (!%p20_p0) target bundleno = 8 (0x8), region = 105 }
 0x4a0   :  { %2071 = vsyncpa [#allocation3], 1 }
 0x4a1   :  { %2073 = vsyncpa [#allocation3 + $0x1], 1 }
 0x4a2   :  { %2074 = vsyncpa [#allocation6], 1 }
 0x4a3   :  { %2075 = vsyncpa [#allocation4], 1 }
 0x4a4   :  { %2077 = vsyncpa [#allocation4 + $0x1], 1 }

</bundles_post_ra>
